<compile_context>
chip_gen: v7x
topology: tpu7x:2x2x1
jax: 0.10.0
libtpu: 0.0.40
codegen_flags: <defaults>
</compile_context>

<pallas_src>
import functools

import jax
import jax.numpy as jnp
from jax.experimental import pallas as pl
from jax.experimental.pallas import tpu as pltpu


# --------------------------- hardware-aware planning -------------------------
def _physical_vmem_bytes():
    try:
        return int(pltpu.get_tpu_info().vmem_capacity_bytes)
    except Exception:
        return 64 * 1024 * 1024  # conservative v7x-sized fallback


def _vmem_limit_bytes():
    phys = _physical_vmem_bytes()
    if phys >= 96 * 1024 * 1024:
        # v4/v5e/v5p/v6e class parts: 128 MiB physical, default scoped limit is
        # far lower — raise it to ~100 MiB with headroom.
        return min(phys - 24 * 1024 * 1024, 100 * 1024 * 1024)
    # v7x class: 64 MiB physical -> ~52 MiB usable with headroom.
    return max(phys - 12 * 1024 * 1024, 32 * 1024 * 1024)


def _tm_target():
    """Token-tile target per generation (intensity ~= tm FLOP / weight byte)."""
    try:
        kind = jax.devices()[0].device_kind.lower()
    except Exception:
        kind = ""
    if "v6" in kind:
        return 1024  # v6e balance ~650 FLOP/byte -> tm~1024 flips to MXU-bound
    if "v7" in kind or "7x" in kind:
        return 512   # v7x balance ~310, only 64 MiB VMEM
    if "v5" in kind:
        return 512   # v5e balance ~240
    return 512


_TM_CANDS = (1024, 768, 512, 384, 256, 128)
_TH_CANDS = (1024, 512, 256, 128)


def _plan_tiles(T, D, H, vmem_limit, tm_target, *, x_bytes=2, w_bytes=2, out_bytes=2):
    """Pick (tm, th): largest token tile <= target that fits the VMEM budget,
    shrinking the hidden tile before the token tile (tm protects intensity)."""
    t128 = ((T + 127) // 128) * 128
    tm_cap = max(128, min(tm_target, t128))
    tm_list = [c for c in _TM_CANDS if c <= tm_cap]
    th_list = [c for c in _TH_CANDS if c <= H and H % c == 0] or [H]
    budget = int(vmem_limit * 0.75)  # leave room for Mosaic internal scratch

    def footprint(tm, th):
        return (2 * tm * D * x_bytes            # x tile (double buffered)
                + 2 * D * th * w_bytes          # W1 chunk
                + 2 * th * D * w_bytes          # W2 chunk
                + 2 * th * 4 + 2 * D * 4        # b1 / b2 chunks
                + 2 * tm * 4                    # combine weights
                + 2 * tm * D * out_bytes        # output block (bf16)
                + tm * D * 4)                   # f32 accumulator scratch

    for tm in tm_list:
        for th in th_list:
            if footprint(tm, th) <= budget:
                return tm, th
    return tm_list[-1], th_list[-1]


# ------------------------- expert + combine kernel --------------------------
def _moe_kernel(x_ref, w1_ref, b1_ref, w2_ref, b2_ref, cw_ref, o_ref, acc_ref,
                *, approximate_gelu):
    """Grid = (token_tiles, E, H_tiles).  acc_ref: f32 combined-output
    accumulator for this token tile (resident across the e and h reduction
    axes).  The combine weight is folded into the hidden activation, so no
    per-expert FFN scratch is needed."""
    e = pl.program_id(1)
    h = pl.program_id(2)
    n_e = pl.num_programs(1)
    n_h = pl.num_programs(2)

    @pl.when((e == 0) & (h == 0))
    def _():
        acc_ref[...] = jnp.zeros_like(acc_ref)

    # Hidden chunk of expert e:  gelu(x @ W1[:, hc] + b1[:, hc])
    hc = (
        jnp.dot(x_ref[...], w1_ref[...], preferred_element_type=jnp.float32)
        + b1_ref[...]
    )
    # tanh GELU lowers to the EUP (its own VLIW slot); set approximate=False to
    # bit-match PyTorch nn.GELU's exact erf default.
    hc = jax.nn.gelu(hc, approximate=approximate_gelu)

    # Fold the combine weight into the activation and accumulate the second
    # matmul directly into the combined-output accumulator (f32).
    acc_ref[...] += jnp.dot(
        (cw_ref[...] * hc).astype(w2_ref.dtype),
        w2_ref[...],
        preferred_element_type=jnp.float32,
    )

    # b2 contribution once per (expert, token tile), after the H reduction.
    @pl.when(h == n_h - 1)
    def _():
        acc_ref[...] += cw_ref[...] * b2_ref[...]

    @pl.when((e == n_e - 1) & (h == n_h - 1))
    def _():
        o_ref[...] = acc_ref[...].astype(o_ref.dtype)


def moe_experts_combine(x, w1, b1, w2, b2, combine_w, *, tm, th,
                        vmem_limit_bytes, out_dtype=jnp.bfloat16,
                        approximate_gelu=True):
    """x: (T, D) bf16; w1: (E, D, H) bf16; b1: (E, 1, H) f32; w2: (E, H, D)
    bf16; b2: (E, 1, D) f32; combine_w: (E, T, 1) f32.  Returns (T, D)."""
    T, D = x.shape
    E, _, H = w1.shape
    assert T % tm == 0 and H % th == 0
    grid = (T // tm, E, H // th)

    kernel = functools.partial(_moe_kernel, approximate_gelu=approximate_gelu)
    return pl.pallas_call(
        kernel,
        out_shape=jax.ShapeDtypeStruct((T, D), out_dtype),
        grid=grid,
        in_specs=[
            pl.BlockSpec((tm, D), lambda i, e, h: (i, 0)),           # x tile
            pl.BlockSpec((None, D, th), lambda i, e, h: (e, 0, h)),  # W1 chunk
            pl.BlockSpec((None, 1, th), lambda i, e, h: (e, 0, h)),  # b1 chunk
            pl.BlockSpec((None, th, D), lambda i, e, h: (e, h, 0)),  # W2 chunk
            pl.BlockSpec((None, 1, D), lambda i, e, h: (e, 0, 0)),   # b2
            pl.BlockSpec((None, tm, 1), lambda i, e, h: (e, i, 0)),  # combine w
        ],
        out_specs=pl.BlockSpec((tm, D), lambda i, e, h: (i, 0)),
        scratch_shapes=[
            pltpu.VMEM((tm, D), jnp.float32),   # combined-output accumulator
        ],
        compiler_params=pltpu.CompilerParams(
            # token tiles independent (megacore split); expert & hidden axes
            # are reductions over the resident accumulator.
            dimension_semantics=("parallel", "arbitrary", "arbitrary"),
            vmem_limit_bytes=vmem_limit_bytes,
        ),
    )(x, w1, b1, w2, b2, combine_w)


# ------------------------------- FMoE wrapper --------------------------------
class FMoEPallas:
    """Single-worker fastmoe.FMoE with NaiveGate and FFN (Linear-GELU-Linear)
    experts.  Expert compute + gather + gate-score combine is one fused Pallas
    kernel; tiles and VMEM limits are derived per TPU generation."""

    def __init__(self, num_expert=4, d_model=128, d_hidden=256, top_k=2,
                 key=None, approximate_gelu=True, out_dtype=jnp.bfloat16):
        self.num_expert = num_expert
        self.d_model = d_model
        self.d_hidden = d_hidden
        self.top_k = top_k
        self.approximate_gelu = approximate_gelu
        self.out_dtype = out_dtype
        if key is None:
            key = jax.random.PRNGKey(0)
        kg, kgb, k1, k1b, k2, k2b = jax.random.split(key, 6)
        s = 0.02
        # NaiveGate linear (PyTorch weight (E, D)) stored transposed; the tiny
        # (T,D)@(D,E) gate GEMM stays in plain JAX (E << 128 lanes).
        self.wg_t = (s * jax.random.normal(kg, (d_model, num_expert))).astype(jnp.float32)
        self.bg = (s * jax.random.normal(kgb, (1, num_expert))).astype(jnp.float32)
        # Per-expert FFN weights, pre-transposed (E, d_in, d_out), bf16 for MXU.
        self.w1 = (s * jax.random.normal(k1, (num_expert, d_model, d_hidden))).astype(jnp.bfloat16)
        self.b1 = (s * jax.random.normal(k1b, (num_expert, 1, d_hidden))).astype(jnp.float32)
        self.w2 = (s * jax.random.normal(k2, (num_expert, d_hidden, d_model))).astype(jnp.bfloat16)
        self.b2 = (s * jax.random.normal(k2b, (num_expert, 1, d_model))).astype(jnp.float32)
        # Per-generation planning (done once).
        self._vmem_limit = _vmem_limit_bytes()
        self._tm_target = _tm_target()

    def _gate(self, x):
        logits = jnp.dot(x, self.wg_t, preferred_element_type=jnp.float32) + self.bg
        top_vals, top_idx = jax.lax.top_k(logits, self.top_k)
        gate_score = jax.nn.softmax(top_vals, axis=-1)
        return top_idx, gate_score

    def __call__(self, x):
        # x: (T, d_model) f32
        T, D = x.shape
        top_idx, gate_score = self._gate(x)                                    # (T,k)
        # combine weights: cw[e, i] = sum_k score[i,k] * [idx[i,k] == e]
        one_hot = jax.nn.one_hot(top_idx, self.num_expert, dtype=jnp.float32)  # (T,k,E)
        cw = jnp.einsum("tk,tke->et", gate_score, one_hot)[:, :, None]         # (E,T,1)

        out_bytes = jnp.dtype(self.out_dtype).itemsize
        tm, th = _plan_tiles(T, D, self.d_hidden, self._vmem_limit,
                             self._tm_target, out_bytes=out_bytes)
        t_pad = ((T + tm - 1) // tm) * tm
        xb = x.astype(self.w1.dtype)
        if t_pad != T:
            # Zero-pad tokens to a tile multiple (padded rows have zero combine
            # weight and are sliced off below).
            xb = jnp.pad(xb, ((0, t_pad - T), (0, 0)))
            cw = jnp.pad(cw, ((0, 0), (0, t_pad - T), (0, 0)))

        out = moe_experts_combine(
            xb, self.w1, self.b1, self.w2, self.b2, cw,
            tm=tm, th=th, vmem_limit_bytes=self._vmem_limit,
            out_dtype=self.out_dtype, approximate_gelu=self.approximate_gelu,
        )
        return out[:T]  # (T, d_model), self.out_dtype

    # pure-JAX reference of the same forward (for verification)
    def reference(self, x):
        top_idx, gate_score = self._gate(x)
        xb = x.astype(self.w1.dtype)

        def expert_fn(e):
            h = jnp.dot(xb, self.w1[e], preferred_element_type=jnp.float32) + self.b1[e]
            h = jax.nn.gelu(h, approximate=self.approximate_gelu)
            return (
                jnp.dot(h.astype(self.w2.dtype), self.w2[e],
                        preferred_element_type=jnp.float32)
                + self.b2[e]
            )

        outs = jnp.stack([expert_fn(e) for e in range(self.num_expert)], axis=0)  # (E,T,D)
        sel = jnp.take_along_axis(
            jnp.transpose(outs, (1, 0, 2)), top_idx[:, :, None], axis=1
        )  # (T, k, D)
        return jnp.einsum("tk,tkd->td", gate_score, sel)


# TODO(synk): multi-worker all-to-all (MOEScatter/MOEGather across ep_group),
# slice_group Slice/AllGather, dynamic expert placement (isend/irecv parameter
# migration), gate-history all-reduce, and mask_dict recovery are
# distributed / host-side features with no single-chip Pallas equivalent.

if __name__ == "__main__":
    T, D, H, E, K = 256, 128, 256, 4, 2
    key = jax.random.PRNGKey(0)
    kx, kp = jax.random.split(key)
    x = jax.random.normal(kx, (T, D), dtype=jnp.float32)

    moe = FMoEPallas(num_expert=E, d_model=D, d_hidden=H, top_k=K, key=kp)
    out = jax.block_until_ready(moe(x))

    ref = moe.reference(x)
    assert out.shape == (T, D)
    # Output is bf16 -> compare in f32 with a bf16-appropriate tolerance.
    assert jnp.allclose(out.astype(jnp.float32), ref, atol=2e-2, rtol=2e-2), \
        "mismatch vs reference"
    print("KERNEL_OK")
</pallas_src>

<mosaic_0001>
module attributes {stable_mosaic.version = 11 : i64} {
  func.func @_moe_kernel(%arg0: i32, %arg1: i32, %arg2: i32, %arg3: memref<256x128xbf16, #tpu.memory_space<vmem>>, %arg4: memref<1x128x256xbf16, #tpu.memory_space<vmem>>, %arg5: memref<1x1x256xf32, #tpu.memory_space<vmem>>, %arg6: memref<1x256x128xbf16, #tpu.memory_space<vmem>>, %arg7: memref<1x1x128xf32, #tpu.memory_space<vmem>>, %arg8: memref<1x256x1xf32, #tpu.memory_space<vmem>>, %arg9: memref<256x128xbf16, #tpu.memory_space<vmem>>, %arg10: memref<256x128xf32, #tpu.memory_space<vmem>>) attributes {dimension_semantics = [#tpu.dimension_semantics<parallel>, #tpu.dimension_semantics<arbitrary>, #tpu.dimension_semantics<arbitrary>], iteration_bounds = array<i64: 1, 4, 1>, scalar_prefetch = 0 : i64, scratch_operands = 1 : i64, tpu.core_type = #tpu.core_type<tc>, window_params = [{transform_indices = @transform_0, window_bounds = array<i64: 256, 128>}, {transform_indices = @transform_1, window_bounds = array<i64: 1, 128, 256>}, {transform_indices = @transform_2, window_bounds = array<i64: 1, 1, 256>}, {transform_indices = @transform_3, window_bounds = array<i64: 1, 256, 128>}, {transform_indices = @transform_4, window_bounds = array<i64: 1, 1, 128>}, {transform_indices = @transform_5, window_bounds = array<i64: 1, 256, 1>}, {transform_indices = @transform_6, window_bounds = array<i64: 256, 128>}]} {
    %c0_i32 = arith.constant 0 : i32
    %0 = arith.cmpi eq, %arg1, %c0_i32 : i32
    %c0_i32_0 = arith.constant 0 : i32
    %1 = arith.cmpi eq, %arg2, %c0_i32_0 : i32
    %2 = arith.andi %0, %1 : i1
    %3 = arith.extui %2 : i1 to i32
    %c0_i32_1 = arith.constant 0 : i32
    %4 = arith.cmpi ne, %3, %c0_i32_1 : i32
    scf.if %4 {
      %cst_28 = arith.constant 0.000000e+00 : f32
      %45 = vector.broadcast %cst_28 : f32 to vector<256x128xf32>
      %c0_29 = arith.constant 0 : index
      %c0_30 = arith.constant 0 : index
      %46 = vector.load %arg10[%c0_29, %c0_30] : memref<256x128xf32, #tpu.memory_space<vmem>>, vector<256x128xf32>
      tpu.vector_store %arg10[%c0_29, %c0_30], %45 {strides = array<i32>} : memref<256x128xf32, #tpu.memory_space<vmem>>, vector<256x128xf32>,
    } else {
    }
    %c0 = arith.constant 0 : index
    %c0_2 = arith.constant 0 : index
    %5 = vector.load %arg3[%c0, %c0_2] : memref<256x128xbf16, #tpu.memory_space<vmem>>, vector<256x128xbf16>
    %c0_3 = arith.constant 0 : index
    %c0_4 = arith.constant 0 : index
    %c0_5 = arith.constant 0 : index
    %6 = vector.load %arg4[%c0_3, %c0_4, %c0_5] : memref<1x128x256xbf16, #tpu.memory_space<vmem>>, vector<1x128x256xbf16>
    %7 = vector.shape_cast %6 : vector<1x128x256xbf16> to vector<128x256xbf16>
    %cst = arith.constant dense<0.000000e+00> : vector<256x256xf32>
    %8 = tpu.matmul %5, %7, %cst {dimension_numbers = #tpu.dot_dimension_numbers<[1], [0], [0], [1], [0, 0, 1, 1], [], []>} : vector<256x128xbf16>, vector<128x256xbf16>, vector<256x256xf32> -> vector<256x256xf32>
    %c0_6 = arith.constant 0 : index
    %c0_7 = arith.constant 0 : index
    %c0_8 = arith.constant 0 : index
    %9 = vector.load %arg5[%c0_6, %c0_7, %c0_8] : memref<1x1x256xf32, #tpu.memory_space<vmem>>, vector<1x1x256xf32>
    %10 = vector.shape_cast %9 : vector<1x1x256xf32> to vector<1x256xf32>
    %11 = vector.broadcast %10 : vector<1x256xf32> to vector<256x256xf32>
    %12 = arith.addf %8, %11 : vector<256x256xf32>
    %13 = arith.mulf %12, %12 : vector<256x256xf32>
    %14 = arith.mulf %12, %13 : vector<256x256xf32>
    %cst_9 = arith.constant 4.471500e-02 : f32
    %15 = vector.broadcast %cst_9 : f32 to vector<256x256xf32>
    %16 = arith.mulf %15, %14 : vector<256x256xf32>
    %17 = arith.addf %12, %16 : vector<256x256xf32>
    %cst_10 = arith.constant 0.797884583 : f32
    %18 = vector.broadcast %cst_10 : f32 to vector<256x256xf32>
    %19 = arith.mulf %18, %17 : vector<256x256xf32>
    %20 = math.tanh %19 : vector<256x256xf32>
    %cst_11 = arith.constant 1.000000e+00 : f32
    %21 = vector.broadcast %cst_11 : f32 to vector<256x256xf32>
    %22 = arith.addf %21, %20 : vector<256x256xf32>
    %cst_12 = arith.constant 5.000000e-01 : f32
    %23 = vector.broadcast %cst_12 : f32 to vector<256x256xf32>
    %24 = arith.mulf %23, %22 : vector<256x256xf32>
    %25 = arith.mulf %12, %24 : vector<256x256xf32>
    %c0_13 = arith.constant 0 : index
    %c0_14 = arith.constant 0 : index
    %26 = vector.load %arg10[%c0_13, %c0_14] : memref<256x128xf32, #tpu.memory_space<vmem>>, vector<256x128xf32>
    %c0_15 = arith.constant 0 : index
    %c0_16 = arith.constant 0 : index
    %c0_17 = arith.constant 0 : index
    %27 = vector.load %arg8[%c0_15, %c0_16, %c0_17] : memref<1x256x1xf32, #tpu.memory_space<vmem>>, vector<1x256x1xf32>
    %28 = vector.shape_cast %27 : vector<1x256x1xf32> to vector<256x1xf32>
    %29 = vector.broadcast %28 : vector<256x1xf32> to vector<256x256xf32>
    %30 = arith.mulf %29, %25 : vector<256x256xf32>
    %31 = arith.truncf %30 : vector<256x256xf32> to vector<256x256xbf16>
    %c0_18 = arith.constant 0 : index
    %c0_19 = arith.constant 0 : index
    %c0_20 = arith.constant 0 : index
    %32 = vector.load %arg6[%c0_18, %c0_19, %c0_20] : memref<1x256x128xbf16, #tpu.memory_space<vmem>>, vector<1x256x128xbf16>
    %33 = vector.shape_cast %32 : vector<1x256x128xbf16> to vector<256x128xbf16>
    %cst_21 = arith.constant dense<0.000000e+00> : vector<256x128xf32>
    %34 = tpu.matmul %31, %33, %cst_21 {dimension_numbers = #tpu.dot_dimension_numbers<[1], [0], [0], [1], [0, 0, 1, 1], [], []>} : vector<256x256xbf16>, vector<256x128xbf16>, vector<256x128xf32> -> vector<256x128xf32>
    %35 = arith.addf %26, %34 : vector<256x128xf32>
    %c0_22 = arith.constant 0 : index
    %c0_23 = arith.constant 0 : index
    %36 = vector.load %arg10[%c0_22, %c0_23] : memref<256x128xf32, #tpu.memory_space<vmem>>, vector<256x128xf32>
    tpu.vector_store %arg10[%c0_22, %c0_23], %35 {strides = array<i32>} : memref<256x128xf32, #tpu.memory_space<vmem>>, vector<256x128xf32>,
    %c0_i32_24 = arith.constant 0 : i32
    %37 = arith.cmpi eq, %arg2, %c0_i32_24 : i32
    %38 = arith.extui %37 : i1 to i32
    %c0_i32_25 = arith.constant 0 : i32
    %39 = arith.cmpi ne, %38, %c0_i32_25 : i32
    scf.if %39 {
      %c0_28 = arith.constant 0 : index
      %c0_29 = arith.constant 0 : index
      %45 = vector.load %arg10[%c0_28, %c0_29] : memref<256x128xf32, #tpu.memory_space<vmem>>, vector<256x128xf32>
      %c0_30 = arith.constant 0 : index
      %c0_31 = arith.constant 0 : index
      %c0_32 = arith.constant 0 : index
      %46 = vector.load %arg8[%c0_30, %c0_31, %c0_32] : memref<1x256x1xf32, #tpu.memory_space<vmem>>, vector<1x256x1xf32>
      %47 = vector.shape_cast %46 : vector<1x256x1xf32> to vector<256x1xf32>
      %c0_33 = arith.constant 0 : index
      %c0_34 = arith.constant 0 : index
      %c0_35 = arith.constant 0 : index
      %48 = vector.load %arg7[%c0_33, %c0_34, %c0_35] : memref<1x1x128xf32, #tpu.memory_space<vmem>>, vector<1x1x128xf32>
      %49 = vector.shape_cast %48 : vector<1x1x128xf32> to vector<1x128xf32>
      %50 = vector.broadcast %47 : vector<256x1xf32> to vector<256x128xf32>
      %51 = vector.broadcast %49 : vector<1x128xf32> to vector<256x128xf32>
      %52 = arith.mulf %50, %51 : vector<256x128xf32>
      %53 = arith.addf %45, %52 : vector<256x128xf32>
      %c0_36 = arith.constant 0 : index
      %c0_37 = arith.constant 0 : index
      %54 = vector.load %arg10[%c0_36, %c0_37] : memref<256x128xf32, #tpu.memory_space<vmem>>, vector<256x128xf32>
      tpu.vector_store %arg10[%c0_36, %c0_37], %53 {strides = array<i32>} : memref<256x128xf32, #tpu.memory_space<vmem>>, vector<256x128xf32>,
    } else {
    }
    %c3_i32 = arith.constant 3 : i32
    %40 = arith.cmpi eq, %arg1, %c3_i32 : i32
    %c0_i32_26 = arith.constant 0 : i32
    %41 = arith.cmpi eq, %arg2, %c0_i32_26 : i32
    %42 = arith.andi %40, %41 : i1
    %43 = arith.extui %42 : i1 to i32
    %c0_i32_27 = arith.constant 0 : i32
    %44 = arith.cmpi ne, %43, %c0_i32_27 : i32
    scf.if %44 {
      %c0_28 = arith.constant 0 : index
      %c0_29 = arith.constant 0 : index
      %45 = vector.load %arg10[%c0_28, %c0_29] : memref<256x128xf32, #tpu.memory_space<vmem>>, vector<256x128xf32>
      %46 = arith.truncf %45 : vector<256x128xf32> to vector<256x128xbf16>
      %c0_30 = arith.constant 0 : index
      %c0_31 = arith.constant 0 : index
      %47 = vector.load %arg9[%c0_30, %c0_31] : memref<256x128xbf16, #tpu.memory_space<vmem>>, vector<256x128xbf16>
      tpu.vector_store %arg9[%c0_30, %c0_31], %46 {strides = array<i32>} : memref<256x128xbf16, #tpu.memory_space<vmem>>, vector<256x128xbf16>,
    } else {
    }
    return
  }
  func.func @transform_0(%arg0: i32, %arg1: i32, %arg2: i32) -> (i32, i32) {
    %c0_i32 = arith.constant 0 : i32
    %c0_i32_0 = arith.constant 0 : i32
    return %arg0, %c0_i32 : i32, i32
  }
  func.func @transform_1(%arg0: i32, %arg1: i32, %arg2: i32) -> (i32, i32, i32) {
    %c0_i32 = arith.constant 0 : i32
    %c0_i32_0 = arith.constant 0 : i32
    return %arg1, %c0_i32, %arg2 : i32, i32, i32
  }
  func.func @transform_2(%arg0: i32, %arg1: i32, %arg2: i32) -> (i32, i32, i32) {
    %c0_i32 = arith.constant 0 : i32
    %c0_i32_0 = arith.constant 0 : i32
    return %arg1, %c0_i32, %arg2 : i32, i32, i32
  }
  func.func @transform_3(%arg0: i32, %arg1: i32, %arg2: i32) -> (i32, i32, i32) {
    %c0_i32 = arith.constant 0 : i32
    %c0_i32_0 = arith.constant 0 : i32
    return %arg1, %arg2, %c0_i32 : i32, i32, i32
  }
  func.func @transform_4(%arg0: i32, %arg1: i32, %arg2: i32) -> (i32, i32, i32) {
    %c0_i32 = arith.constant 0 : i32
    %c0_i32_0 = arith.constant 0 : i32
    %c0_i32_1 = arith.constant 0 : i32
    return %arg1, %c0_i32, %c0_i32_0 : i32, i32, i32
  }
  func.func @transform_5(%arg0: i32, %arg1: i32, %arg2: i32) -> (i32, i32, i32) {
    %c0_i32 = arith.constant 0 : i32
    %c0_i32_0 = arith.constant 0 : i32
    return %arg1, %arg0, %c0_i32 : i32, i32, i32
  }
  func.func @transform_6(%arg0: i32, %arg1: i32, %arg2: i32) -> (i32, i32) {
    %c0_i32 = arith.constant 0 : i32
    %c0_i32_0 = arith.constant 0 : i32
    return %arg0, %c0_i32 : i32, i32
  }
}

</mosaic_0001>

<bundles_post_ra>
// kernel: tpu_custom_call.1
= control target key start
LH: loop header
LB: loop body
LE: loop exit
PB: predicated region body
PF: predicated region fallthrough
CT: control target
= control target key end

     0   :  { %11 = vsyncpa [#allocation4], 0  ;;  %s4675_s0 = inlined_call_operand.hbm [shape: bf16[256,128], index: 0, kind: input, shape index: {}]   ;;  %s4676_s1 = inlined_call_operand.vmem [shape: bf16[4,128,256], index: 1, kind: input, shape index: {}]   ;;  %s4677_s2 = inlined_call_operand.vmem [shape: f32[4,1,256], index: 2, kind: input, shape index: {}]   ;;  %s4678_s3 = inlined_call_operand.vmem [shape: bf16[4,256,128], index: 3, kind: input, shape index: {}]   ;;  %s4679_s4 = inlined_call_operand.vmem [shape: f32[4,1,128], index: 4, kind: input, shape index: {}]   ;;  %s4680_s5 = inlined_call_operand.vmem [shape: f32[4,256,1], index: 5, kind: input, shape index: {}]   ;;  %s4681_s6 = inlined_call_operand.hbm [shape: bf16[256,128], index: 6, kind: output, shape index: {}]  }
   0x1   :  { %12 = vsyncpa [#allocation5], 0  ;;  %s3518_s21 = smov 0   ;;  %s3520_s22 = smov 0  }
   0x2   :  { %s3522_s23 = smov 0  }
   0x3 LB: > { %s2811_s24 = sadd.s32 4294967295, %s3473_s23   ;;  %s33_s25 = sadd.s32 1, %s3469_s22  ;;  %s3473_s23 = sphi %s3522_s23, %s18_s23   ;;  %s3469_s22 = sphi %s3520_s22, %s4694_s22   ;;  %s3465_s21 = sphi %s3518_s21, %s4693_s21  }
   0x4   : > { %p35_p0 = scmp.ge.s32.totalorder %s33_s25, 4  ;;  %p2812_p1 = scmp.ge.s32.totalorder %s3473_s23, 1 }
   0x5   : > { %p232_p2 = scmp.lt.s32.totalorder %s3473_s23, 5  ;;  %p3545_p4 = scmp.eq.s32.totalorder %s2811_s24, 0 }
   0x6   : > { %s4696_s25 = smov (%p35_p0, %s33_s25), 0  ;;  %s3475_s28 = smov [#allocation3]  }
   0x7   : > { %p3539_p3 = pnand %p2812_p1, %p232_p2  ;;  %s247_s29 = sshll.u32 %s3475_s28, 4  ;;  %s248_s29 = int_to_ptr.vmem [resolvable:$true] %s247_s29 }
   0x8   : > { %s4686_s27 = scalar_select %p3545_p4, 1, 0 }
   0x9   : > { %s4685_s26 = scalar_select %p3539_p3, 1, 0 }
   0xa   : > { %p3163_p5 = pneg %p3539_p3  ;;  %s3389_s9 = scalar_lea.hbm %s4675_s0, 2048 }
   0xb   : > { %p3390_p7 = scmp.ne.s32.totalorder %s4675_s0, %s3389_s9  ;;  %p3396_p11 = scmp.lt.u32.totalorder %s3389_s9, %s4675_s0 }
   0xc   : > { %p3553_p6 = pnand %p3545_p4, %p3163_p5 }
   0xe   : > { %p3391_p8 = pneg %p3553_p6 }
  0x10   : > { %p3392_p9 = pnand %p3391_p8, %p3390_p7 }
  0x12   : > { %p3393_p10 = pneg %p3392_p9 }
  0x14   : > { %p3398_p12 = pnand %p3396_p11, %p3393_p10 }
  0x16   : > { %3401 = shalt.err (!%p3398_p12)
}
  0x17   : > { %s3402_s14 = scalar_lea.vmem %s248_s29, 2048  ;;  %p3410_p2 = scmp.lt.s32.totalorder %s248_s29, %s248_s29 }
  0x18   : > { %p3403_p13 = scmp.ne.s32.totalorder %s248_s29, %s3402_s14  ;;  %p3411_p5 = scmp.lt.s32.totalorder %s3402_s14, %s3402_s14 }
  0x1a   : > { %p3405_p0 = pnand %p3403_p13, %p3391_p8  ;;  %p3412_p4 = por %p3411_p5, %p3410_p2 }
  0x1c   : > { %p3406_p1 = pneg %p3405_p0 }
  0x1e   : > { %p3413_p3 = pnand %p3412_p4, %p3406_p1 }
  0x20   : > { %3416 = shalt.err (!%p3413_p3)
}
  0x21   : > { %s3476_s15 = smov 64   ;;  %s3477_s16 = smov 4  }
  0x22   : > { %3166 = dma.hbm_to_vmem [thread:$0]  (!%p3553_p6), %s4675_s0, 2048, %s248_s29, [#allocation4], %s3476_s15, %s3476_s15, %s3477_s16  }
  0x23   : > { %p4688_p7 = scmp.ne.s32.totalorder %s4685_s26, 0 }
  0x25   : > { %320 = sbr.rel (%p4688_p7) target bundleno = 777 (0x309), region = 44 }
  0x2c   : > { %p4689_p9 = scmp.ne.s32.totalorder %s4686_s27, 0 }
  0x2e   : > { %3456 = dma.done.wait (%p4689_p9), [#allocation4], 2048  }
  0x2f   : > { %3458 = vsyncadd (%p4689_p9), [#allocation4], 4294965248  ;;  %p380_p3 = scmp.lt.s32.totalorder %s3465_s21, 3  ;;  %p423_p4 = scmp.eq.s32.totalorder %s3465_s21, 0 }
  0x30   : > { %v3478_v0 = vmov (%p423_p4), 0.0  }
  0x31   : > { %s3582_s19 = scalar_select %p380_p3, %s3465_s21, 3 }
  0x32   : > { %428 = sbr.rel (!%p423_p4) target bundleno = 66 (0x42), region = 52  ;;  %429 = vst [vmem:[#allocation2] sm:$0xff] (%p423_p4), %v3478_v0  ;;  %430 = vst [vmem:[#allocation2 + $0x8] sm:$0xff] (%p423_p4), %v3478_v0 }
  0x33   : > { %s2911_s20 = sshll.u32 %s3582_s19, 7  ;;  %s2819_s26 = sshll.u32 %s3582_s19, 1  ;;  %431 = vst [vmem:[#allocation2 + $0x10] sm:$0xff] (%p423_p4), %v3478_v0  ;;  %432 = vst [vmem:[#allocation2 + $0x18] sm:$0xff] (%p423_p4), %v3478_v0 }
  0x34   : > { %s3589_s30 = scalar_lea.vmem %s4676_s1, %s2911_s20  ;;  %s3594_s8 = scalar_lea.vmem %s4677_s2, %s2819_s26  ;;  %433 = vst [vmem:[#allocation2 + $0x20] sm:$0xff] (%p423_p4), %v3478_v0  ;;  %434 = vst [vmem:[#allocation2 + $0x28] sm:$0xff] (%p423_p4), %v3478_v0 }
  0x35   : > { %s3599_s11 = scalar_lea.vmem %s4678_s3, %s2911_s20  ;;  %s410_s14 = scalar_lea.vmem %s4679_s4, %s3582_s19  ;;  %435 = vst [vmem:[#allocation2 + $0x30] sm:$0xff] (%p423_p4), %v3478_v0  ;;  %436 = vst [vmem:[#allocation2 + $0x38] sm:$0xff] (%p423_p4), %v3478_v0 }
  0x36   : > { %s2913_s15 = sshll.u32 %s3582_s19, 8  ;;  %437 = vst [vmem:[#allocation2 + $0x40] sm:$0xff] (%p423_p4), %v3478_v0  ;;  %438 = vst [vmem:[#allocation2 + $0x48] sm:$0xff] (%p423_p4), %v3478_v0 }
  0x37   : > { %s3609_s18 = scalar_lea.vmem %s4680_s5, %s2913_s15  ;;  %439 = vst [vmem:[#allocation2 + $0x50] sm:$0xff] (%p423_p4), %v3478_v0  ;;  %440 = vst [vmem:[#allocation2 + $0x58] sm:$0xff] (%p423_p4), %v3478_v0 }
  0x38   : > { %441 = vst [vmem:[#allocation2 + $0x60] sm:$0xff] (%p423_p4), %v3478_v0  ;;  %442 = vst [vmem:[#allocation2 + $0x68] sm:$0xff] (%p423_p4), %v3478_v0 }
  0x39   : > { %443 = vst [vmem:[#allocation2 + $0x70] sm:$0xff] %v3478_v0  ;;  %444 = vst [vmem:[#allocation2 + $0x78] sm:$0xff] %v3478_v0 }
  0x3a   : > { %445 = vst [vmem:[#allocation2 + $0x80] sm:$0xff] %v3478_v0  ;;  %446 = vst [vmem:[#allocation2 + $0x88] sm:$0xff] %v3478_v0 }
  0x3b   : > { %447 = vst [vmem:[#allocation2 + $0x90] sm:$0xff] %v3478_v0  ;;  %448 = vst [vmem:[#allocation2 + $0x98] sm:$0xff] %v3478_v0 }
  0x3c   : > { %449 = vst [vmem:[#allocation2 + $0xa0] sm:$0xff] %v3478_v0  ;;  %450 = vst [vmem:[#allocation2 + $0xa8] sm:$0xff] %v3478_v0 }
  0x3d   : > { %451 = vst [vmem:[#allocation2 + $0xb0] sm:$0xff] %v3478_v0  ;;  %452 = vst [vmem:[#allocation2 + $0xb8] sm:$0xff] %v3478_v0 }
  0x3e   : > { %453 = vst [vmem:[#allocation2 + $0xc0] sm:$0xff] %v3478_v0  ;;  %454 = vst [vmem:[#allocation2 + $0xc8] sm:$0xff] %v3478_v0 }
  0x3f   : > { %455 = vst [vmem:[#allocation2 + $0xd0] sm:$0xff] %v3478_v0  ;;  %456 = vst [vmem:[#allocation2 + $0xd8] sm:$0xff] %v3478_v0 }
  0x40   : > { %457 = vst [vmem:[#allocation2 + $0xe0] sm:$0xff] %v3478_v0  ;;  %458 = vst [vmem:[#allocation2 + $0xe8] sm:$0xff] %v3478_v0 }
  0x41   : > { %459 = vst [vmem:[#allocation2 + $0xf0] sm:$0xff] %v3478_v0  ;;  %460 = vst [vmem:[#allocation2 + $0xf8] sm:$0xff] %v3478_v0 }
  0x42 PF: > { %v3205_v1 = vld [vmem:[%s3589_s30 + $0x4] ss:$8 sps:$4 sm:$0xff]   ;;  %v3207_v2 = vld [vmem:[%s3589_s30] ss:$8 sps:$4 sm:$0xff]   ;;  %v3479_v3 = vmov 0   ;;  %v3629_v11 = vld [vmem:[%s3609_s18 + $0x10] sm:$0xff] }
  0x43   : > { %3203 = vset.pattern.permute.xlu0 %v3479_v3  ;;  %3204 = vset.pattern.permute.xlu1 %v3479_v3  ;;  %v3208_v4 = vld [vmem:[%s3589_s30 + $0x14] ss:$8 sps:$4 sm:$0xff]   ;;  %v3210_v5 = vld [vmem:[%s3589_s30 + $0x10] ss:$8 sps:$4 sm:$0xff]   ;;  %v3211_v6 = vld [vmem:[%s3589_s30 + $0x24] ss:$8 sps:$4 sm:$0xff]  }
  0x44   : > { %697 = vmatprep.subr.bf16.mxu0 %v3205_v1  ;;  %729 = vmatprep.mubr.bf16.mxu0 %v3479_v3  ;;  %v3620_v7 = vld [vmem:[%s3609_s18] sm:$0xff]  ;;  %v3214_v9 = vld [vmem:[%s3589_s30 + $0x34] ss:$8 sps:$4 sm:$0xff]   ;;  %v3626_v10 = vld [vmem:[%s3609_s18 + $0x8] sm:$0xff]  ;;  %p2469_p6 = scmp.eq.s32.totalorder %s3465_s21, 3 }
  0x45   : > { %698 = vmatpush1.bf16.msra.mxu0 %v3207_v2  ;;  %v3213_v8 = vld [vmem:[%s3589_s30 + $0x20] ss:$8 sps:$4 sm:$0xff]   ;;  %1532 = vperm.xlu0 %3203, %v3620_v7   ;;  %v3216_v12 = vld [vmem:[%s3589_s30 + $0x30] ss:$8 sps:$4 sm:$0xff]   ;;  %v3217_v13 = vld [vmem:[%s3589_s30 + $0x44] ss:$8 sps:$4 sm:$0xff]  }
  0x46   : > { %699 = vmatprep.subr.bf16.mxu0 %v3208_v4  ;;  %1542 = vperm.xlu1 %3204, %v3629_v11   ;;  %v3636_v14 = vld [vmem:[%s3609_s18 + $0x20] sm:$0xff]  ;;  %v3639_v15 = vld [vmem:[%s3609_s18 + $0x18] sm:$0xff]  ;;  %v3646_v18 = vld [vmem:[%s3609_s18 + $0x30] sm:$0xff] }
  0x47   : > { %v3219_v16 = vld [vmem:[%s3589_s30 + $0x40] ss:$8 sps:$4 sm:$0xff]   ;;  %v3220_v17 = vld [vmem:[%s3589_s30 + $0x54] ss:$8 sps:$4 sm:$0xff]   ;;  %v3222_v20 = vld [vmem:[%s3589_s30 + $0x50] ss:$8 sps:$4 sm:$0xff]  }
  0x48   : > { %v3649_v19 = vld [vmem:[%s3609_s18 + $0x28] sm:$0xff]  ;;  %v3656_v22 = vld [vmem:[%s3609_s18 + $0x40] sm:$0xff]  ;;  %v3659_v23 = vld [vmem:[%s3609_s18 + $0x38] sm:$0xff] }
  0x49   : > { %700 = vmatpush1.bf16.msra.mxu0 %v3210_v5  ;;  %1537 = vperm.xlu0 %3203, %v3626_v10   ;;  %v3223_v21 = vld [vmem:[%s3589_s30 + $0x64] ss:$8 sps:$4 sm:$0xff]   ;;  %v3225_v24 = vld [vmem:[%s3589_s30 + $0x60] ss:$8 sps:$4 sm:$0xff]   ;;  %v3226_v25 = vld [vmem:[%s3589_s30 + $0x74] ss:$8 sps:$4 sm:$0xff]  }
  0x4a   : > { %701 = vmatprep.subr.bf16.mxu0 %v3211_v6  ;;  %1547 = vperm.xlu1 %3204, %v3639_v15   ;;  %v3666_v26 = vld [vmem:[%s3609_s18 + $0x50] sm:$0xff]  ;;  %v3669_v27 = vld [vmem:[%s3609_s18 + $0x48] sm:$0xff]  ;;  %v3675_v29 = vld [vmem:[%s3609_s18 + $0x60] sm:$0xff] }
  0x4b   : > { %v3228_v28 = vld [vmem:[%s3589_s30 + $0x70] ss:$8 sps:$4 sm:$0xff]   ;;  %v3229_v31 = vld [vmem:[#allocation3] sm:$0xff]   ;;  %v3686_v33 = vld [vmem:[%s3609_s18 + $0x68] sm:$0xff] }
  0x4c   : > { %v3678_v30 = vld [vmem:[%s3609_s18 + $0x58] sm:$0xff]  ;;  %v3683_v32 = vld [vmem:[%s3609_s18 + $0x70] sm:$0xff]  ;;  %v3230_v34 = vld [vmem:[#allocation3 + $0x8] sm:$0xff]  }
  0x4d   : > { %702 = vmatpush1.bf16.msra.mxu0 %v3213_v8  ;;  %1552 = vperm.xlu0 %3203, %v3636_v14   ;;  %v3692_v35 = vld [vmem:[%s3609_s18 + $0x80] sm:$0xff]  ;;  %v3695_v36 = vld [vmem:[%s3609_s18 + $0x78] sm:$0xff]  ;;  %v3698_v37 = vld [vmem:[%s3609_s18 + $0x90] sm:$0xff] }
  0x4e   : > { %703 = vmatprep.subr.bf16.mxu0 %v3214_v9  ;;  %1557 = vperm.xlu1 %3204, %v3649_v19   ;;  %v3702_v38 = vld [vmem:[%s3609_s18 + $0x88] sm:$0xff]  ;;  %v3706_v39 = vld [vmem:[%s3609_s18 + $0xa0] sm:$0xff]  ;;  %v3711_v40 = vld [vmem:[%s3609_s18 + $0x98] sm:$0xff] }
  0x4f   : > { %v3231_v41 = vld [vmem:[#allocation3 + $0x10] sm:$0xff]   ;;  %v3720_v43 = vld [vmem:[%s3609_s18 + $0xa8] sm:$0xff]  ;;  %v3726_v44 = vld [vmem:[%s3609_s18 + $0xc0] sm:$0xff] }
  0x50   : > { %v3717_v42 = vld [vmem:[%s3609_s18 + $0xb0] sm:$0xff]  ;;  %v3729_v45 = vld [vmem:[%s3609_s18 + $0xb8] sm:$0xff]  ;;  %v3737_v48 = vld [vmem:[%s3609_s18 + $0xc8] sm:$0xff] }
  0x51   : > { %704 = vmatpush1.bf16.msra.mxu0 %v3216_v12  ;;  %1562 = vperm.xlu0 %3203, %v3646_v18   ;;  %v3232_v46 = vld [vmem:[#allocation3 + $0x18] sm:$0xff]   ;;  %v3734_v47 = vld [vmem:[%s3609_s18 + $0xd0] sm:$0xff]  ;;  %v3743_v49 = vld [vmem:[%s3609_s18 + $0xe0] sm:$0xff] }
  0x52   : > { %705 = vmatprep.subr.bf16.mxu0 %v3217_v13  ;;  %1567 = vperm.xlu1 %3204, %v3659_v23   ;;  %v3746_v50 = vld [vmem:[%s3609_s18 + $0xd8] sm:$0xff]  ;;  %v3233_v51 = vld [vmem:[#allocation3 + $0x20] sm:$0xff]   ;;  %v3751_v52 = vld [vmem:[%s3609_s18 + $0xf0] sm:$0xff] }
  0x53   : > { %v3754_v53 = vld [vmem:[%s3609_s18 + $0xe8] sm:$0xff]  ;;  %v3760_v54 = vld [vmem:[%s3609_s18 + $0xf8] sm:$0xff]  ;;  %v3235_v56 = vld [vmem:[#allocation3 + $0x30] sm:$0xff]  }
  0x54   : > { %v3234_v55 = vld [vmem:[#allocation3 + $0x28] sm:$0xff]   ;;  %v3236_v57 = vld [vmem:[#allocation3 + $0x38] sm:$0xff]   ;;  %v3237_v58 = vld [vmem:[#allocation3 + $0x40] sm:$0xff]  }
  0x55   : > { %706 = vmatpush1.bf16.msra.mxu0 %v3219_v16  ;;  %1572 = vperm.xlu0 %3203, %v3656_v22   ;;  %v3238_v59 = vld [vmem:[#allocation3 + $0x48] sm:$0xff]   ;;  %v3239_v60 = vld [vmem:[#allocation3 + $0x50] sm:$0xff]   ;;  %v3240_v61 = vld [vmem:[#allocation3 + $0x58] sm:$0xff]  }
  0x56   : > { %707 = vmatprep.subr.bf16.mxu0 %v3220_v17  ;;  %1577 = vperm.xlu1 %3204, %v3669_v27   ;;  %v3245_v62 = vld [vmem:[%s3599_s11 + $0x40] sm:$0xff]   ;;  %v3247_v0 = vld [vmem:[%s3599_s11 + $0x48] sm:$0xff]   ;;  %v3249_v4 = vld [vmem:[%s3599_s11 + $0x50] sm:$0xff]  }
  0x57   : > { %v3246_v63 = vld [vmem:[%s3599_s11] sm:$0xff]   ;;  %3043 = vmatprep.subr.bf16.mxu1 %v3245_v62  ;;  %v3248_v2 = vld [vmem:[%s3599_s11 + $0x8] sm:$0xff]   ;;  %v3250_v5 = vld [vmem:[%s3599_s11 + $0x10] sm:$0xff]  }
  0x58   : > { %3044 = vmatpush3.bf16.msra.mxu1 %v3246_v63  ;;  %v3241_v1 = vld [vmem:[#allocation3 + $0x60] sm:$0xff]   ;;  %v3251_v6 = vld [vmem:[%s3599_s11 + $0x58] sm:$0xff]   ;;  %v3243_v12 = vld [vmem:[#allocation3 + $0x70] sm:$0xff]  }
  0x59   : > { %708 = vmatpush1.bf16.msra.mxu0 %v3222_v20  ;;  %1582 = vperm.xlu0 %3203, %v3666_v26   ;;  %v3252_v8 = vld [vmem:[%s3599_s11 + $0x18] sm:$0xff]   ;;  %v3253_v9 = vld [vmem:[%s3599_s11 + $0x60] sm:$0xff]   ;;  %v3256_v13 = vld [vmem:[%s3599_s11 + $0x28] sm:$0xff]  }
  0x5a   : > { %709 = vmatprep.subr.bf16.mxu0 %v3223_v21  ;;  %1587 = vperm.xlu1 %3204, %v3678_v30   ;;  %v3259_v16 = vld [vmem:[%s3599_s11 + $0x78] sm:$0xff]  }
  0x5b   : > { %3045 = vmatprep.subr.bf16.mxu1 %v3247_v0  ;;  %v3244_v17 = vld [vmem:[#allocation3 + $0x78] sm:$0xff]  }
  0x5c   : > { %3046 = vmatpush3.bf16.msra.mxu1 %v3248_v2 }
  0x5d   : > { %710 = vmatpush1.bf16.msra.mxu0 %v3225_v24  ;;  %1592 = vperm.xlu0 %3203, %v3675_v29  }
  0x5e   : > { %711 = vmatprep.subr.bf16.mxu0 %v3226_v25  ;;  %1597 = vperm.xlu1 %3204, %v3686_v33  }
  0x5f   : > { %3047 = vmatprep.subr.bf16.mxu1 %v3249_v4 }
  0x60   : > { %3048 = vmatpush3.bf16.msra.mxu1 %v3250_v5 }
  0x61   : > { %712 = vmatpush1.bf16.msra.mxu0 %v3228_v28  ;;  %1602 = vperm.xlu0 %3203, %v3683_v32  }
  0x62   : > { %1607 = vperm.xlu1 %3204, %v3695_v36   ;;  %3049 = vmatprep.subr.bf16.mxu1 %v3251_v6 }
  0x64   : > { %730 = vmatmul.mubr.bf16.vlgmr.msra.gmra.mrb[0].mxu0 %v3229_v31  ;;  %3050 = vmatpush3.bf16.msra.mxu1 %v3252_v8 }
  0x65   : > { %739 = vmatprep.mubr.bf16.mxu0 %v3479_v3  ;;  %1612 = vperm.xlu0 %3203, %v3692_v35  }
  0x66   : > { %1617 = vperm.xlu1 %3204, %v3702_v38   ;;  %3051 = vmatprep.subr.bf16.mxu1 %v3253_v9 }
  0x69   : > { %1622 = vperm.xlu0 %3203, %v3698_v37  }
  0x6a   : > { %1627 = vperm.xlu1 %3204, %v3711_v40  }
  0x6c   : > { %740 = vmatmul.mubr.bf16.gmra.mrb[4].mxu0 %v3230_v34 }
  0x6d   : > { %749 = vmatprep.mubr.bf16.mxu0 %v3479_v3  ;;  %1632 = vperm.xlu0 %3203, %v3706_v39  }
  0x6e   : > { %1637 = vperm.xlu1 %3204, %v3720_v43  }
  0x71   : > { %1642 = vperm.xlu0 %3203, %v3717_v42  }
  0x72   : > { %1647 = vperm.xlu1 %3204, %v3729_v45  }
  0x74   : > { %750 = vmatmul.mubr.bf16.gmra.mrb[8].mxu0 %v3231_v41 }
  0x75   : > { %759 = vmatprep.mubr.bf16.mxu0 %v3479_v3  ;;  %1652 = vperm.xlu0 %3203, %v3726_v44  }
  0x76   : > { %1657 = vperm.xlu1 %3204, %v3737_v48  }
  0x79   : > { %1662 = vperm.xlu0 %3203, %v3734_v47  }
  0x7a   : > { %1667 = vperm.xlu1 %3204, %v3746_v50  }
  0x7c   : > { %760 = vmatmul.mubr.bf16.gmra.mrb[12].mxu0 %v3232_v46 }
  0x7d   : > { %769 = vmatprep.mubr.bf16.mxu0 %v3479_v3  ;;  %1672 = vperm.xlu0 %3203, %v3743_v49  }
  0x7e   : > { %1677 = vperm.xlu1 %3204, %v3754_v53  }
  0x81   : > { %1682 = vperm.xlu0 %3203, %v3751_v52  }
  0x82   : > { %1687 = vperm.xlu1 %3204, %v3760_v54  }
  0x84   : > { %770 = vmatmul.mubr.bf16.gmra.mrb[16].mxu0 %v3233_v51 }
  0x85   : > { %779 = vmatprep.mubr.bf16.mxu0 %v3479_v3  ;;  %2209 = vperm.xlu0 %3203, %v3620_v7   ;;  %v3242_v7 = vld [vmem:[#allocation3 + $0x68] sm:$0xff]  }
  0x86   : > { %2214 = vperm.xlu1 %3204, %v3626_v10   ;;  %v3254_v10 = vld [vmem:[%s3599_s11 + $0x20] sm:$0xff]  }
  0x87   : > { %3052 = vmatpush3.bf16.msra.mxu1 %v3254_v10 }
  0x89   : > { %2219 = vperm.xlu0 %3203, %v3629_v11   ;;  %v3255_v11 = vld [vmem:[%s3599_s11 + $0x68] sm:$0xff]  }
  0x8a   : > { %2224 = vperm.xlu1 %3204, %v3639_v15   ;;  %3053 = vmatprep.subr.bf16.mxu1 %v3255_v11  ;;  %v3258_v15 = vld [vmem:[%s3599_s11 + $0x30] sm:$0xff]  }
  0x8b   : > { %3054 = vmatpush3.bf16.msra.mxu1 %v3256_v13 }
  0x8c   : > { %780 = vmatmul.mubr.bf16.gmra.mrb[20].mxu0 %v3234_v55 }
  0x8d   : > { %789 = vmatprep.mubr.bf16.mxu0 %v3479_v3  ;;  %2229 = vperm.xlu0 %3203, %v3636_v14   ;;  %v3257_v14 = vld [vmem:[%s3599_s11 + $0x70] sm:$0xff]  }
  0x8e   : > { %2234 = vperm.xlu1 %3204, %v3649_v19   ;;  %3055 = vmatprep.subr.bf16.mxu1 %v3257_v14  ;;  %v511_v19 = vlaneseq }
  0x8f   : > { %3056 = vmatpush3.bf16.msra.mxu1 %v3258_v15 }
  0x90   : > { %3057 = vmatprep.subr.bf16.mxu1 %v3259_v16  ;;  %v512_v20 = vshrl.u32 %v511_v19, 7 }
  0x91   : > { %2239 = vperm.xlu0 %3203, %v3646_v18   ;;  %v3260_v18 = vld [vmem:[%s3599_s11 + $0x38] sm:$0xff]  }
  0x92   : > { %2244 = vperm.xlu1 %3204, %v3659_v23   ;;  %v513_v21 = vsub.s32 0, %v512_v20  ;;  %v517_v23 = vsub.s32 1, %v512_v20 }
  0x93   : > { %3058 = vmatpush3.bf16.msra.mxu1 %v3260_v18 }
  0x94   : > { %790 = vmatmul.mubr.bf16.gmra.mrb[24].mxu0 %v3235_v56 }
  0x95   : > { %799 = vmatprep.mubr.bf16.mxu0 %v3479_v3  ;;  %2249 = vperm.xlu0 %3203, %v3656_v22   ;;  %v509_v22 = vld [vmem:[%s3594_s8] sm:$0x3] }
  0x96   : > { %2254 = vperm.xlu1 %3204, %v3669_v27   ;;  %v3822_v24 = vrot.slane %v509_v22, %v513_v21  ;;  %v3824_v25 = vrot.slane %v509_v22, %v517_v23 }
  0x99   : > { %2259 = vperm.xlu0 %3203, %v3666_v26  }
  0x9a   : > { %2264 = vperm.xlu1 %3204, %v3678_v30  }
  0x9c   : > { %800 = vmatmul.mubr.bf16.gmra.mrb[28].mxu0 %v3236_v57 }
  0x9d   : > { %809 = vmatprep.mubr.bf16.mxu0 %v3479_v3  ;;  %2269 = vperm.xlu0 %3203, %v3675_v29  }
  0x9e   : > { %2274 = vperm.xlu1 %3204, %v3686_v33  }
  0xa1   : > { %2279 = vperm.xlu0 %3203, %v3683_v32  }
  0xa2   : > { %2284 = vperm.xlu1 %3204, %v3695_v36  }
  0xa4   : > { %810 = vmatmul.mubr.bf16.gmra.mrb[32].mxu0 %v3237_v58 }
  0xa5   : > { %819 = vmatprep.mubr.bf16.mxu0 %v3479_v3  ;;  %2289 = vperm.xlu0 %3203, %v3692_v35  }
  0xa6   : > { %2294 = vperm.xlu1 %3204, %v3702_v38  }
  0xa9   : > { %2299 = vperm.xlu0 %3203, %v3698_v37  }
  0xaa   : > { %2304 = vperm.xlu1 %3204, %v3711_v40  }
  0xac   : > { %820 = vmatmul.mubr.bf16.gmra.mrb[36].mxu0 %v3238_v59 }
  0xad   : > { %829 = vmatprep.mubr.bf16.mxu0 %v3479_v3  ;;  %2309 = vperm.xlu0 %3203, %v3706_v39  }
  0xae   : > { %2314 = vperm.xlu1 %3204, %v3720_v43  }
  0xb1   : > { %2319 = vperm.xlu0 %3203, %v3717_v42  }
  0xb2   : > { %2324 = vperm.xlu1 %3204, %v3729_v45  }
  0xb4   : > { %830 = vmatmul.mubr.bf16.gmra.mrb[40].mxu0 %v3239_v60 }
  0xb5   : > { %839 = vmatprep.mubr.bf16.mxu0 %v3479_v3  ;;  %2329 = vperm.xlu0 %3203, %v3726_v44  }
  0xb6   : > { %2334 = vperm.xlu1 %3204, %v3737_v48  }
  0xb9   : > { %2339 = vperm.xlu0 %3203, %v3734_v47  }
  0xba   : > { %2344 = vperm.xlu1 %3204, %v3746_v50  }
  0xbc   : > { %840 = vmatmul.mubr.bf16.gmra.mrb[44].mxu0 %v3240_v61 }
  0xbd   : > { %849 = vmatprep.mubr.bf16.mxu0 %v3479_v3  ;;  %2349 = vperm.xlu0 %3203, %v3743_v49  }
  0xbe   : > { %2354 = vperm.xlu1 %3204, %v3754_v53  }
  0xc1   : > { %2359 = vperm.xlu0 %3203, %v3751_v52  }
  0xc2   : > { %2364 = vperm.xlu1 %3204, %v3760_v54  }
  0xc4   : > { %850 = vmatmul.mubr.bf16.gmra.mrb[48].mxu0 %v3241_v1 }
  0xc5   : > { %859 = vmatprep.mubr.bf16.mxu0 %v3479_v3 }
  0xcc   : > { %860 = vmatmul.mubr.bf16.gmra.mrb[52].mxu0 %v3242_v7 }
  0xcd   : > { %869 = vmatprep.mubr.bf16.mxu0 %v3479_v3 }
  0xd4   : > { %870 = vmatmul.mubr.bf16.gmra.mrb[56].mxu0 %v3243_v12 }
  0xd5   : > { %879 = vmatprep.mubr.bf16.mxu0 %v3479_v3 }
  0xdc   : > { %880 = vmatmul.mubr.bf16.gmra.mrb[60].mxu0 %v3244_v17 }
 0x137   : > { %v731_v26 = vpop.f32.mrb[0].mxu0 }
 0x138   : > { %v3827_v3 = vadd.f32 %v731_v26, %v3822_v24  ;;  %v733_v27 = vpop.f32.mrb[1].mxu0 }
 0x139   : > { %v3830_v28 = vadd.f32 %v733_v27, %v3824_v25  ;;  %v735_v29 = vpop.f32.mrb[2].mxu0 }
 0x13a   : > { %v890_v30 = vmul.f32 %v3827_v3, %v3827_v3  ;;  %v3835_v31 = vadd.f32 %v735_v29, %v3822_v24  ;;  %v737_v32 = vpop.f32.mrb[3].mxu0 }
 0x13b   : > { %v891_v33 = vmul.f32 %v3830_v28, %v3830_v28  ;;  %v3840_v34 = vadd.f32 %v737_v32, %v3824_v25 }
 0x13c   : > { %v954_v35 = vmul.f32 %v890_v30, %v3827_v3  ;;  %v892_v36 = vmul.f32 %v3835_v31, %v3835_v31 }
 0x13d   : > { %v955_v37 = vmul.f32 %v891_v33, %v3830_v28  ;;  %v893_v38 = vmul.f32 %v3840_v34, %v3840_v34 }
 0x13e   : > { %v1018_v39 = vmul.f32 0.044715, %v954_v35  ;;  %v956_v40 = vmul.f32 %v892_v36, %v3835_v31 }
 0x13f   : > { %v1019_v41 = vmul.f32 0.044715, %v955_v37  ;;  %v957_v42 = vmul.f32 %v893_v38, %v3840_v34  ;;  %v741_v43 = vpop.f32.mrb[4].mxu0 }
 0x140   : > { %v1082_v44 = vadd.f32 %v1018_v39, %v3827_v3  ;;  %v1020_v45 = vmul.f32 0.044715, %v956_v40  ;;  %v3852_v46 = vadd.f32 %v741_v43, %v3822_v24  ;;  %v743_v47 = vpop.f32.mrb[5].mxu0 }
 0x141   : > { %v1083_v48 = vadd.f32 %v1019_v41, %v3830_v28  ;;  %v1021_v49 = vmul.f32 0.044715, %v957_v42  ;;  %v3856_v50 = vadd.f32 %v743_v47, %v3824_v25  ;;  %v745_v51 = vpop.f32.mrb[6].mxu0 }
 0x142   : > { %v1146_v52 = vmul.f32 0.7978846, %v1082_v44  ;;  %v1084_v53 = vadd.f32 %v1020_v45, %v3835_v31  ;;  %v894_v54 = vmul.f32 %v3852_v46, %v3852_v46  ;;  %v3862_v55 = vadd.f32 %v745_v51, %v3822_v24  ;;  %v747_v56 = vpop.f32.mrb[7].mxu0 }
 0x143   : > { %v1147_v57 = vmul.f32 0.7978846, %v1083_v48  ;;  %v1085_v58 = vadd.f32 %v1021_v49, %v3840_v34  ;;  %v895_v59 = vmul.f32 %v3856_v50, %v3856_v50  ;;  %v3868_v60 = vadd.f32 %v747_v56, %v3824_v25 }
 0x144   : > { %3261 = vtanh.f32 %v1146_v52  ;;  %v1148_v61 = vmul.f32 0.7978846, %v1084_v53  ;;  %v958_v62 = vmul.f32 %v894_v54, %v3852_v46  ;;  %v896_v63 = vmul.f32 %v3862_v55, %v3862_v55 }
 0x145   : > { %v1149_v0 = vmul.f32 0.7978846, %v1085_v58  ;;  %v959_v1 = vmul.f32 %v895_v59, %v3856_v50  ;;  %v897_v2 = vmul.f32 %v3868_v60, %v3868_v60 }
 0x146   : > { %3263 = vtanh.f32 %v1148_v61  ;;  %v1022_v4 = vmul.f32 0.044715, %v958_v62  ;;  %v960_v5 = vmul.f32 %v896_v63, %v3862_v55 }
 0x147   : > { %v1023_v6 = vmul.f32 0.044715, %v959_v1  ;;  %v961_v7 = vmul.f32 %v897_v2, %v3868_v60  ;;  %v751_v8 = vpop.f32.mrb[8].mxu0  ;;  %3265 = vtanh.f32 %v1147_v57 }
 0x148   : > { %v1086_v9 = vadd.f32 %v1022_v4, %v3852_v46  ;;  %v1024_v10 = vmul.f32 0.044715, %v960_v5  ;;  %v3880_v11 = vadd.f32 %v751_v8, %v3822_v24  ;;  %v753_v12 = vpop.f32.mrb[9].mxu0  ;;  %3267 = vtanh.f32 %v1149_v0 }
 0x149   : > { %v1087_v13 = vadd.f32 %v1023_v6, %v3856_v50  ;;  %v1025_v14 = vmul.f32 0.044715, %v961_v7  ;;  %v3884_v15 = vadd.f32 %v753_v12, %v3824_v25  ;;  %v755_v16 = vpop.f32.mrb[10].mxu0 }
 0x14a   : > { %v1150_v17 = vmul.f32 0.7978846, %v1086_v9  ;;  %v1088_v18 = vadd.f32 %v1024_v10, %v3862_v55  ;;  %v898_v19 = vmul.f32 %v3880_v11, %v3880_v11  ;;  %v3890_v20 = vadd.f32 %v755_v16, %v3822_v24  ;;  %v757_v21 = vpop.f32.mrb[11].mxu0 }
 0x14b   : > { %v1151_v22 = vmul.f32 0.7978846, %v1087_v13  ;;  %v1089_v23 = vadd.f32 %v1025_v14, %v3868_v60  ;;  %v899_v26 = vmul.f32 %v3884_v15, %v3884_v15  ;;  %v3896_v27 = vadd.f32 %v757_v21, %v3824_v25 }
 0x14c   : > { %3269 = vtanh.f32 %v1150_v17  ;;  %v1152_v29 = vmul.f32 0.7978846, %v1088_v18  ;;  %v962_v30 = vmul.f32 %v898_v19, %v3880_v11  ;;  %v900_v32 = vmul.f32 %v3890_v20, %v3890_v20 }
 0x14d   : > { %3271 = vtanh.f32 %v1151_v22  ;;  %v1153_v33 = vmul.f32 0.7978846, %v1089_v23  ;;  %v963_v35 = vmul.f32 %v899_v26, %v3884_v15  ;;  %v901_v36 = vmul.f32 %v3896_v27, %v3896_v27 }
 0x14e   : > { %v3262_v37 = vpop.eup %3261  ;;  %3273 = vtanh.f32 %v1152_v29  ;;  %v1026_v38 = vmul.f32 0.044715, %v962_v30  ;;  %v964_v39 = vmul.f32 %v900_v32, %v3890_v20 }
 0x14f   : > { %3275 = vtanh.f32 %v1153_v33  ;;  %v1027_v40 = vmul.f32 0.044715, %v963_v35  ;;  %v965_v41 = vmul.f32 %v901_v36, %v3896_v27  ;;  %v761_v42 = vpop.f32.mrb[12].mxu0  ;;  %v3910_v49 = vadd.f32 1.0, %v3262_v37 }
 0x150   : > { %v3264_v43 = vpop.eup %3263  ;;  %v1090_v44 = vadd.f32 %v1026_v38, %v3880_v11  ;;  %v1028_v45 = vmul.f32 0.044715, %v964_v39  ;;  %v3908_v47 = vadd.f32 %v761_v42, %v3822_v24  ;;  %v763_v48 = vpop.f32.mrb[13].mxu0 }
 0x151   : > { %v1091_v51 = vadd.f32 %v1027_v40, %v3884_v15  ;;  %v1029_v52 = vmul.f32 0.044715, %v965_v41  ;;  %v3914_v53 = vadd.f32 %v763_v48, %v3824_v25  ;;  %v765_v54 = vpop.f32.mrb[14].mxu0  ;;  %v3916_v56 = vadd.f32 1.0, %v3264_v43  ;;  %v3266_v57 = vpop.eup %3265 }
 0x152   : > { %v1154_v58 = vmul.f32 0.7978846, %v1090_v44  ;;  %v1092_v59 = vadd.f32 %v1028_v45, %v3890_v20  ;;  %v902_v61 = vmul.f32 %v3908_v47, %v3908_v47  ;;  %v3922_v62 = vadd.f32 %v765_v54, %v3822_v24  ;;  %v767_v63 = vpop.f32.mrb[15].mxu0  ;;  %v3268_v0 = vpop.eup %3267 }
 0x153   : > { %v1155_v1 = vmul.f32 0.7978846, %v1091_v51  ;;  %v1093_v2 = vadd.f32 %v1029_v52, %v3896_v27  ;;  %v903_v4 = vmul.f32 %v3914_v53, %v3914_v53  ;;  %v3928_v5 = vadd.f32 %v767_v63, %v3824_v25  ;;  %v1533_v42 = vpop.permute.xlu0 %1532 }
 0x154   : > { %3277 = vtanh.f32 %v1154_v58  ;;  %v1156_v6 = vmul.f32 0.7978846, %v1092_v59  ;;  %v966_v7 = vmul.f32 %v902_v61, %v3908_v47  ;;  %v904_v8 = vmul.f32 %v3922_v62, %v3922_v62 }
 0x155   : > { %3279 = vtanh.f32 %v1155_v1  ;;  %v1157_v9 = vmul.f32 0.7978846, %v1093_v2  ;;  %v967_v10 = vmul.f32 %v903_v4, %v3914_v53  ;;  %v905_v12 = vmul.f32 %v3928_v5, %v3928_v5 }
 0x156   : > { %v3936_v13 = vpop.eup %3269  ;;  %3281 = vtanh.f32 %v1156_v6  ;;  %v1030_v14 = vmul.f32 0.044715, %v966_v7  ;;  %v968_v16 = vmul.f32 %v904_v8, %v3922_v62  ;;  %v1275_v17 = vadd.f32 1.0, %v3266_v57 }
 0x157   : > { %v3939_v18 = vpop.eup %3271  ;;  %3283 = vtanh.f32 %v1157_v9  ;;  %v1031_v19 = vmul.f32 0.044715, %v967_v10  ;;  %v969_v21 = vmul.f32 %v905_v12, %v3928_v5  ;;  %v771_v22 = vpop.f32.mrb[16].mxu0  ;;  %v1277_v23 = vadd.f32 1.0, %v3268_v0 }
 0x158   : > { %v3942_v26 = vpop.eup %3273  ;;  %v1094_v29 = vadd.f32 %v1030_v14, %v3908_v47  ;;  %v1032_v30 = vmul.f32 0.044715, %v968_v16  ;;  %v3946_v32 = vadd.f32 %v771_v22, %v3822_v24  ;;  %v773_v33 = vpop.f32.mrb[17].mxu0  ;;  %v1339_v35 = vmul.f32 0.5, %v1275_v17 }
 0x159   : > { %v3948_v36 = vpop.eup %3275  ;;  %v1095_v37 = vadd.f32 %v1031_v19, %v3914_v53  ;;  %v1033_v38 = vmul.f32 0.044715, %v969_v21  ;;  %v3952_v39 = vadd.f32 %v773_v33, %v3824_v25  ;;  %v775_v40 = vpop.f32.mrb[18].mxu0  ;;  %v1341_v41 = vmul.f32 0.5, %v1277_v23 }
 0x15a   : > { %v1158_v43 = vmul.f32 0.7978846, %v1094_v29  ;;  %v1096_v44 = vadd.f32 %v1032_v30, %v3922_v62  ;;  %v906_v45 = vmul.f32 %v3946_v32, %v3946_v32  ;;  %v3958_v48 = vadd.f32 %v775_v40, %v3822_v24  ;;  %v777_v51 = vpop.f32.mrb[19].mxu0  ;;  %v1538_v19 = vpop.permute.xlu0 %1537 }
 0x15b   : > { %v1159_v52 = vmul.f32 0.7978846, %v1095_v37  ;;  %v1097_v54 = vadd.f32 %v1033_v38, %v3928_v5  ;;  %v907_v57 = vmul.f32 %v3952_v39, %v3952_v39  ;;  %v3964_v58 = vadd.f32 %v777_v51, %v3824_v25 }
 0x15c   : > { %3285 = vtanh.f32 %v1158_v43  ;;  %v1160_v59 = vmul.f32 0.7978846, %v1096_v44  ;;  %v970_v61 = vmul.f32 %v906_v45, %v3946_v32  ;;  %v908_v63 = vmul.f32 %v3958_v48, %v3958_v48 }
 0x15d   : > { %3287 = vtanh.f32 %v1159_v52  ;;  %v1161_v0 = vmul.f32 0.7978846, %v1097_v54  ;;  %v971_v1 = vmul.f32 %v907_v57, %v3952_v39  ;;  %v909_v2 = vmul.f32 %v3964_v58, %v3964_v58 }
 0x15e   : > { %v3972_v4 = vpop.eup %3277  ;;  %3289 = vtanh.f32 %v1160_v59  ;;  %v1034_v6 = vmul.f32 0.044715, %v970_v61  ;;  %v972_v7 = vmul.f32 %v908_v63, %v3958_v48  ;;  %v1403_v8 = vmul.f32 %v1339_v35, %v3830_v28 }
 0x15f   : > { %v3976_v9 = vpop.eup %3279  ;;  %3291 = vtanh.f32 %v1161_v0  ;;  %v1035_v10 = vmul.f32 0.044715, %v971_v1  ;;  %v973_v12 = vmul.f32 %v909_v2, %v3964_v58  ;;  %v1405_v14 = vmul.f32 %v1341_v41, %v3840_v34  ;;  %v781_v16 = vpop.f32.mrb[20].mxu0 }
 0x160   : > { %v3980_v17 = vpop.eup %3281  ;;  %v1098_v21 = vadd.f32 %v1034_v6, %v3946_v32  ;;  %v1036_v22 = vmul.f32 0.044715, %v972_v7  ;;  %v1691_v23 = vmul.f32 %v1533_v42, %v1403_v8  ;;  %v1338_v29 = vmul.f32 0.5, %v3910_v49  ;;  %v783_v30 = vpop.f32.mrb[21].mxu0 }
 0x161   : > { %v3984_v28 = vpop.eup %3283  ;;  %v1099_v33 = vadd.f32 %v1035_v10, %v3952_v39  ;;  %v1037_v35 = vmul.f32 0.044715, %v973_v12  ;;  %v1693_v37 = vmul.f32 %v1538_v19, %v1405_v14  ;;  %v1340_v38 = vmul.f32 0.5, %v3916_v56  ;;  %v785_v34 = vpop.f32.mrb[22].mxu0 }
 0x162   : > { %v1162_v40 = vmul.f32 0.7978846, %v1098_v21  ;;  %v1100_v41 = vadd.f32 %v1036_v22, %v3958_v48  ;;  %v1402_v43 = vmul.f32 %v1338_v29, %v3827_v3  ;;  %v3991_v44 = vadd.f32 %v781_v16, %v3822_v24  ;;  %v787_v45 = vpop.f32.mrb[23].mxu0  ;;  %v1543_v6 = vpop.permute.xlu1 %1542 }
 0x163   : > { %v1163_v49 = vmul.f32 0.7978846, %v1099_v33  ;;  %v1101_v51 = vadd.f32 %v1037_v35, %v3964_v58  ;;  %v1755_v52 = vpack.c.bf16 %v1693_v37, %v1691_v23  ;;  %v1404_v54 = vmul.f32 %v1340_v38, %v3835_v31 }
 0x164   : > { %3293 = vtanh.f32 %v1162_v40  ;;  %v1164_v57 = vmul.f32 0.7978846, %v1100_v41  ;;  %v1690_v59 = vmul.f32 %v1533_v42, %v1402_v43  ;;  %v910_v56 = vmul.f32 %v3991_v44, %v3991_v44 }
 0x165   : > { %3295 = vtanh.f32 %v1163_v49  ;;  %v1165_v61 = vmul.f32 0.7978846, %v1101_v51  ;;  %1946 = vmatprep.mubr.bf16.mxu1 %v1755_v52  ;;  %v1692_v3 = vmul.f32 %v1538_v19, %v1404_v54  ;;  %v3998_v63 = vadd.f32 %v783_v30, %v3824_v25 }
 0x166   : > { %v4000_v0 = vpop.eup %3285  ;;  %3297 = vtanh.f32 %v1164_v57  ;;  %v974_v1 = vmul.f32 %v910_v56, %v3991_v44  ;;  %v4004_v31 = vadd.f32 %v785_v34, %v3822_v24  ;;  %v4007_v42 = vadd.f32 %v787_v45, %v3824_v25 }
 0x167   : > { %v4009_v2 = vpop.eup %3287  ;;  %3299 = vtanh.f32 %v1165_v61  ;;  %v1754_v7 = vpack.c.bf16 %v1692_v3, %v1690_v59  ;;  %v911_v8 = vmul.f32 %v3998_v63, %v3998_v63  ;;  %v1279_v10 = vadd.f32 1.0, %v3939_v18  ;;  %v791_v12 = vpop.f32.mrb[24].mxu0 }
 0x168   : > { %v4014_v14 = vpop.eup %3289  ;;  %v1038_v16 = vmul.f32 0.044715, %v974_v1  ;;  %v912_v19 = vmul.f32 %v4004_v31, %v4004_v31  ;;  %v913_v21 = vmul.f32 %v4007_v42, %v4007_v42  ;;  %v1281_v22 = vadd.f32 1.0, %v3948_v36  ;;  %v793_v23 = vpop.f32.mrb[25].mxu0 }
 0x169   : > { %v4021_v29 = vpop.eup %3291  ;;  %1947 = vmatmul.mubr.bf16.vlgmr.msra.gmra.mrb[0].mxu1 %v1754_v7  ;;  %v975_v30 = vmul.f32 %v911_v8, %v3998_v63  ;;  %v1343_v33 = vmul.f32 0.5, %v1279_v10  ;;  %v1278_v18 = vadd.f32 1.0, %v3936_v13  ;;  %v1280_v35 = vadd.f32 1.0, %v3942_v26  ;;  %v795_v37 = vpop.f32.mrb[26].mxu0 }
 0x16a   : > { %v1102_v38 = vadd.f32 %v1038_v16, %v3991_v44  ;;  %v976_v34 = vmul.f32 %v912_v19, %v4004_v31  ;;  %v977_v40 = vmul.f32 %v913_v21, %v4007_v42  ;;  %v1345_v41 = vmul.f32 0.5, %v1281_v22  ;;  %v797_v36 = vpop.f32.mrb[27].mxu0  ;;  %v1548_v26 = vpop.permute.xlu1 %1547 }
 0x16b   : > { %v1039_v43 = vmul.f32 0.044715, %v975_v30  ;;  %v1407_v45 = vmul.f32 %v1343_v33, %v3856_v50  ;;  %v1342_v49 = vmul.f32 0.5, %v1278_v18  ;;  %v1344_v51 = vmul.f32 0.5, %v1280_v35 }
 0x16c   : > { %v1166_v52 = vmul.f32 0.7978846, %v1102_v38  ;;  %v1040_v54 = vmul.f32 0.044715, %v976_v34  ;;  %v1041_v57 = vmul.f32 0.044715, %v977_v40  ;;  %v1409_v13 = vmul.f32 %v1345_v41, %v3868_v60 }
 0x16d   : > { %v1103_v59 = vadd.f32 %v1039_v43, %v3998_v63  ;;  %v1695_v56 = vmul.f32 %v1543_v6, %v1407_v45  ;;  %v1406_v61 = vmul.f32 %v1342_v49, %v3852_v46  ;;  %v1408_v3 = vmul.f32 %v1344_v51, %v3862_v55 }
 0x16e   : > { %v4034_v1 = vpop.eup %3293  ;;  %3301 = vtanh.f32 %v1166_v52  ;;  %v1104_v50 = vadd.f32 %v1040_v54, %v4004_v31  ;;  %v1105_v7 = vadd.f32 %v1041_v57, %v4007_v42  ;;  %v1697_v8 = vmul.f32 %v1548_v26, %v1409_v13 }
 0x16f   : > { %v4038_v10 = vpop.eup %3295  ;;  %v1167_v16 = vmul.f32 0.7978846, %v1103_v59  ;;  %v1694_v60 = vmul.f32 %v1543_v6, %v1406_v61  ;;  %v1696_v19 = vmul.f32 %v1548_v26, %v1408_v3  ;;  %v4041_v21 = vadd.f32 %v791_v12, %v3822_v24  ;;  %v801_v22 = vpop.f32.mrb[28].mxu0 }
 0x170   : > { %v4043_v46 = vpop.eup %3297  ;;  %v1168_v55 = vmul.f32 0.7978846, %v1104_v50  ;;  %v1169_v30 = vmul.f32 0.7978846, %v1105_v7  ;;  %v1757_v33 = vpack.c.bf16 %v1697_v8, %v1695_v56  ;;  %v4046_v18 = vadd.f32 %v793_v23, %v3824_v25  ;;  %v803_v35 = vpop.f32.mrb[29].mxu0 }
 0x171   : > { %v4048_v38 = vpop.eup %3299  ;;  %3303 = vtanh.f32 %v1167_v16  ;;  %v1756_v34 = vpack.c.bf16 %v1696_v19, %v1694_v60  ;;  %v914_v6 = vmul.f32 %v4041_v21, %v4041_v21  ;;  %v4053_v12 = vadd.f32 %v795_v37, %v3822_v24  ;;  %v805_v40 = vpop.f32.mrb[30].mxu0 }
 0x172   : > { %3305 = vtanh.f32 %v1168_v55  ;;  %1954 = vmatprep.mubr.bf16.mxu1 %v1757_v33  ;;  %v915_v41 = vmul.f32 %v4046_v18, %v4046_v18  ;;  %v4058_v23 = vadd.f32 %v797_v36, %v3824_v25  ;;  %v1283_v43 = vadd.f32 1.0, %v3976_v9  ;;  %v807_v45 = vpop.f32.mrb[31].mxu0  ;;  %v1553_v50 = vpop.permute.xlu0 %1552 }
 0x173   : > { %3307 = vtanh.f32 %v1169_v30  ;;  %1955 = vmatmul.mubr.bf16.gmra.mrb[4].mxu1 %v1756_v34  ;;  %v978_v49 = vmul.f32 %v914_v6, %v4041_v21  ;;  %v916_v37 = vmul.f32 %v4053_v12, %v4053_v12  ;;  %v1285_v51 = vadd.f32 1.0, %v3984_v28  ;;  %v1558_v55 = vpop.permute.xlu1 %1557 }
 0x174   : > { %v979_v52 = vmul.f32 %v915_v41, %v4046_v18  ;;  %v917_v54 = vmul.f32 %v4058_v23, %v4058_v23  ;;  %v1347_v57 = vmul.f32 0.5, %v1283_v43  ;;  %v1282_v36 = vadd.f32 1.0, %v3972_v4 }
 0x175   : > { %v1042_v13 = vmul.f32 0.044715, %v978_v49  ;;  %v980_v9 = vmul.f32 %v916_v37, %v4053_v12  ;;  %v1349_v26 = vmul.f32 0.5, %v1285_v51  ;;  %v1284_v59 = vadd.f32 1.0, %v3980_v17 }
 0x176   : > { %v1043_v56 = vmul.f32 0.044715, %v979_v52  ;;  %v981_v61 = vmul.f32 %v917_v54, %v4058_v23  ;;  %v1411_v3 = vmul.f32 %v1347_v57, %v3884_v15  ;;  %v1346_v28 = vmul.f32 0.5, %v1282_v36 }
 0x177   : > { %v1106_v7 = vadd.f32 %v1042_v13, %v4041_v21  ;;  %v1044_v8 = vmul.f32 0.044715, %v980_v9  ;;  %v1413_v16 = vmul.f32 %v1349_v26, %v3896_v27  ;;  %v1348_v60 = vmul.f32 0.5, %v1284_v59  ;;  %v4075_v4 = vpop.f32.mrb[32].mxu0 }
 0x178   : > { %v4077_v19 = vpop.eup %3301  ;;  %v1107_v17 = vadd.f32 %v1043_v56, %v4046_v18  ;;  %v1045_v30 = vmul.f32 0.044715, %v981_v61  ;;  %v1699_v33 = vmul.f32 %v1553_v50, %v1411_v3  ;;  %v1410_v34 = vmul.f32 %v1346_v28, %v3880_v11  ;;  %v4081_v15 = vpop.f32.mrb[33].mxu0 }
 0x179   : > { %v1170_v6 = vmul.f32 0.7978846, %v1106_v7  ;;  %v1108_v41 = vadd.f32 %v1044_v8, %v4053_v12  ;;  %v1701_v43 = vmul.f32 %v1558_v55, %v1413_v16  ;;  %v1412_v27 = vmul.f32 %v1348_v60, %v3890_v20  ;;  %v4085_v49 = vpop.f32.mrb[34].mxu0 }
 0x17a   : > { %v1171_v37 = vmul.f32 0.7978846, %v1107_v17  ;;  %v1109_v51 = vadd.f32 %v1045_v30, %v4058_v23  ;;  %v1698_v52 = vmul.f32 %v1553_v50, %v1410_v34  ;;  %v4089_v54 = vadd.f32 %v801_v22, %v3822_v24  ;;  %v4091_v57 = vpop.f32.mrb[35].mxu0 }
 0x17b   : > { %v4093_v11 = vpop.eup %3303  ;;  %3309 = vtanh.f32 %v1170_v6  ;;  %v1172_v36 = vmul.f32 0.7978846, %v1108_v41  ;;  %v1759_v13 = vpack.c.bf16 %v1701_v43, %v1699_v33  ;;  %v1700_v9 = vmul.f32 %v1558_v55, %v1412_v27 }
 0x17c   : > { %v4095_v26 = vpop.eup %3305  ;;  %3311 = vtanh.f32 %v1171_v37  ;;  %v1173_v20 = vmul.f32 0.7978846, %v1109_v51  ;;  %v918_v59 = vmul.f32 %v4089_v54, %v4089_v54  ;;  %v4100_v56 = vadd.f32 %v803_v35, %v3824_v25 }
 0x17d   : > { %v4102_v22 = vpop.eup %3307  ;;  %3313 = vtanh.f32 %v1172_v36  ;;  %1962 = vmatprep.mubr.bf16.mxu1 %v1759_v13  ;;  %v1758_v61 = vpack.c.bf16 %v1700_v9, %v1698_v52  ;;  %v4105_v3 = vadd.f32 %v805_v40, %v3822_v24  ;;  %v4108_v28 = vadd.f32 %v807_v45, %v3824_v25  ;;  %v1563_v36 = vpop.permute.xlu0 %1562 }
 0x17e   : > { %3315 = vtanh.f32 %v1173_v20  ;;  %v982_v50 = vmul.f32 %v918_v59, %v4089_v54  ;;  %v919_v7 = vmul.f32 %v4100_v56, %v4100_v56  ;;  %v1287_v35 = vadd.f32 1.0, %v4009_v2  ;;  %v1568_v59 = vpop.permute.xlu1 %1567 }
 0x17f   : > { %1963 = vmatmul.mubr.bf16.gmra.mrb[8].mxu1 %v1758_v61  ;;  %v920_v8 = vmul.f32 %v4105_v3, %v4105_v3  ;;  %v921_v16 = vmul.f32 %v4108_v28, %v4108_v28  ;;  %v1289_v40 = vadd.f32 1.0, %v4021_v29  ;;  %v1286_v45 = vadd.f32 1.0, %v4000_v0  ;;  %v4120_v60 = vpop.f32.mrb[36].mxu0 }
 0x180   : > { %v1046_v55 = vmul.f32 0.044715, %v982_v50  ;;  %v983_v17 = vmul.f32 %v919_v7, %v4100_v56  ;;  %v1351_v30 = vmul.f32 0.5, %v1287_v35  ;;  %v1288_v33 = vadd.f32 1.0, %v4014_v14  ;;  %v4124_v2 = vpop.f32.mrb[37].mxu0 }
 0x181   : > { %v984_v34 = vmul.f32 %v920_v8, %v4105_v3  ;;  %v985_v6 = vmul.f32 %v921_v16, %v4108_v28  ;;  %v1353_v41 = vmul.f32 0.5, %v1289_v40  ;;  %v1350_v43 = vmul.f32 0.5, %v1286_v45  ;;  %v4128_v27 = vpop.f32.mrb[38].mxu0 }
 0x182   : > { %v1110_v0 = vadd.f32 %v1046_v55, %v4089_v54  ;;  %v1047_v29 = vmul.f32 0.044715, %v983_v17  ;;  %v1415_v37 = vmul.f32 %v1351_v30, %v3914_v53  ;;  %v1352_v51 = vmul.f32 0.5, %v1288_v33  ;;  %v4132_v52 = vpop.f32.mrb[39].mxu0 }
 0x183   : > { %v1048_v14 = vmul.f32 0.044715, %v984_v34  ;;  %v1049_v13 = vmul.f32 0.044715, %v985_v6  ;;  %v1417_v9 = vmul.f32 %v1353_v41, %v3928_v5  ;;  %v1414_v20 = vmul.f32 %v1350_v43, %v3908_v47 }
 0x184   : > { %v1174_v61 = vmul.f32 0.7978846, %v1110_v0  ;;  %v1111_v50 = vadd.f32 %v1047_v29, %v4100_v56  ;;  %v1703_v7 = vmul.f32 %v1563_v36, %v1415_v37  ;;  %v1416_v35 = vmul.f32 %v1352_v51, %v3922_v62 }
 0x185   : > { %v4138_v8 = vpop.eup %3309  ;;  %v1112_v53 = vadd.f32 %v1048_v14, %v4105_v3  ;;  %v1113_v16 = vadd.f32 %v1049_v13, %v4108_v28  ;;  %v1705_v40 = vmul.f32 %v1568_v59, %v1417_v9  ;;  %v1702_v45 = vmul.f32 %v1563_v36, %v1414_v20 }
 0x186   : > { %v4142_v55 = vpop.eup %3311  ;;  %3317 = vtanh.f32 %v1174_v61  ;;  %v1175_v5 = vmul.f32 0.7978846, %v1111_v50  ;;  %v1704_v47 = vmul.f32 %v1568_v59, %v1416_v35  ;;  %v4146_v17 = vadd.f32 %v4075_v4, %v3822_v24 }
 0x187   : > { %v4148_v30 = vpop.eup %3313  ;;  %v1176_v62 = vmul.f32 0.7978846, %v1112_v53  ;;  %v1177_v33 = vmul.f32 0.7978846, %v1113_v16  ;;  %v1761_v34 = vpack.c.bf16 %v1705_v40, %v1703_v7  ;;  %v4152_v6 = vadd.f32 %v4081_v15, %v3824_v25  ;;  %v4154_v41 = vpop.f32.mrb[40].mxu0 }
 0x188   : > { %v4156_v43 = vpop.eup %3315  ;;  %3319 = vtanh.f32 %v1175_v5  ;;  %v1760_v0 = vpack.c.bf16 %v1704_v47, %v1702_v45  ;;  %v922_v29 = vmul.f32 %v4146_v17, %v4146_v17  ;;  %v4162_v4 = vadd.f32 %v4085_v49, %v3822_v24  ;;  %v4164_v37 = vpop.f32.mrb[41].mxu0 }
 0x189   : > { %3321 = vtanh.f32 %v1176_v62  ;;  %1970 = vmatprep.mubr.bf16.mxu1 %v1761_v34  ;;  %v923_v15 = vmul.f32 %v4152_v6, %v4152_v6  ;;  %v4170_v51 = vadd.f32 %v4091_v57, %v3824_v25  ;;  %v1291_v36 = vadd.f32 1.0, %v4038_v10  ;;  %v4173_v14 = vpop.f32.mrb[42].mxu0  ;;  %v1573_v5 = vpop.permute.xlu0 %1572 }
 0x18a   : > { %3323 = vtanh.f32 %v1177_v33  ;;  %1971 = vmatmul.mubr.bf16.gmra.mrb[12].mxu1 %v1760_v0  ;;  %v986_v49 = vmul.f32 %v922_v29, %v4146_v17  ;;  %v924_v13 = vmul.f32 %v4162_v4, %v4162_v4  ;;  %v1293_v9 = vadd.f32 1.0, %v4048_v38  ;;  %v4179_v20 = vpop.f32.mrb[43].mxu0 }
 0x18b   : > { %v987_v59 = vmul.f32 %v923_v15, %v4152_v6  ;;  %v925_v57 = vmul.f32 %v4170_v51, %v4170_v51  ;;  %v1355_v61 = vmul.f32 0.5, %v1291_v36  ;;  %v1290_v10 = vadd.f32 1.0, %v4034_v1  ;;  %v1578_v1 = vpop.permute.xlu1 %1577 }
 0x18c   : > { %v1050_v50 = vmul.f32 0.044715, %v986_v49  ;;  %v988_v7 = vmul.f32 %v924_v13, %v4162_v4  ;;  %v1357_v35 = vmul.f32 0.5, %v1293_v9  ;;  %v1292_v53 = vadd.f32 1.0, %v4043_v46 }
 0x18d   : > { %v1051_v16 = vmul.f32 0.044715, %v987_v59  ;;  %v989_v40 = vmul.f32 %v925_v57, %v4170_v51  ;;  %v1419_v38 = vmul.f32 %v1355_v61, %v3952_v39  ;;  %v1354_v45 = vmul.f32 0.5, %v1290_v10 }
 0x18e   : > { %v1114_v47 = vadd.f32 %v1050_v50, %v4146_v17  ;;  %v1052_v62 = vmul.f32 0.044715, %v988_v7  ;;  %v1421_v33 = vmul.f32 %v1357_v35, %v3964_v58  ;;  %v1356_v34 = vmul.f32 0.5, %v1292_v53 }
 0x18f   : > { %v1115_v0 = vadd.f32 %v1051_v16, %v4152_v6  ;;  %v1053_v29 = vmul.f32 0.044715, %v989_v40  ;;  %v1707_v15 = vmul.f32 %v1573_v5, %v1419_v38  ;;  %v1418_v46 = vmul.f32 %v1354_v45, %v3946_v32  ;;  %v4193_v36 = vpop.f32.mrb[44].mxu0 }
 0x190   : > { %v4195_v49 = vpop.eup %3317  ;;  %v1178_v39 = vmul.f32 0.7978846, %v1114_v47  ;;  %v1116_v13 = vadd.f32 %v1052_v62, %v4162_v4  ;;  %v1709_v9 = vmul.f32 %v1578_v1, %v1421_v33  ;;  %v1420_v59 = vmul.f32 %v1356_v34, %v3958_v48  ;;  %v4199_v57 = vpop.f32.mrb[45].mxu0 }
 0x191   : > { %v1179_v58 = vmul.f32 0.7978846, %v1115_v0  ;;  %v1117_v61 = vadd.f32 %v1053_v29, %v4170_v51  ;;  %v1706_v10 = vmul.f32 %v1573_v5, %v1418_v46  ;;  %v4204_v50 = vadd.f32 %v4120_v60, %v3822_v24  ;;  %v4206_v32 = vpop.f32.mrb[46].mxu0 }
 0x192   : > { %v4208_v7 = vpop.eup %3319  ;;  %3325 = vtanh.f32 %v1178_v39  ;;  %v1180_v35 = vmul.f32 0.7978846, %v1116_v13  ;;  %v1763_v53 = vpack.c.bf16 %v1709_v9, %v1707_v15  ;;  %v1708_v16 = vmul.f32 %v1578_v1, %v1420_v59  ;;  %v4210_v40 = vpop.f32.mrb[47].mxu0 }
 0x193   : > { %v4212_v48 = vpop.eup %3321  ;;  %3327 = vtanh.f32 %v1179_v58  ;;  %v1181_v38 = vmul.f32 0.7978846, %v1117_v61  ;;  %v926_v45 = vmul.f32 %v4204_v50, %v4204_v50  ;;  %v4218_v60 = vadd.f32 %v4124_v2, %v3824_v25 }
 0x194   : > { %v4220_v5 = vpop.eup %3323  ;;  %3329 = vtanh.f32 %v1180_v35  ;;  %1978 = vmatprep.mubr.bf16.mxu1 %v1763_v53  ;;  %v1762_v47 = vpack.c.bf16 %v1708_v16, %v1706_v10  ;;  %v4224_v62 = vadd.f32 %v4128_v27, %v3822_v24  ;;  %v4228_v33 = vadd.f32 %v4132_v52, %v3824_v25 }
 0x195   : > { %3331 = vtanh.f32 %v1181_v38  ;;  %v990_v34 = vmul.f32 %v926_v45, %v4204_v50  ;;  %v927_v2 = vmul.f32 %v4218_v60, %v4218_v60  ;;  %v1295_v1 = vadd.f32 1.0, %v4093_v11  ;;  %v1583_v38 = vpop.permute.xlu0 %1582 }
 0x196   : > { %1979 = vmatmul.mubr.bf16.gmra.mrb[16].mxu1 %v1762_v47  ;;  %v928_v0 = vmul.f32 %v4224_v62, %v4224_v62  ;;  %v929_v27 = vmul.f32 %v4228_v33, %v4228_v33  ;;  %v1297_v29 = vadd.f32 1.0, %v4102_v22  ;;  %v1294_v52 = vadd.f32 1.0, %v4077_v19 }
 0x197   : > { %v1054_v15 = vmul.f32 0.044715, %v990_v34  ;;  %v991_v46 = vmul.f32 %v927_v2, %v4218_v60  ;;  %v1359_v39 = vmul.f32 0.5, %v1295_v1  ;;  %v1296_v13 = vadd.f32 1.0, %v4095_v26  ;;  %v4242_v9 = vpop.f32.mrb[48].mxu0  ;;  %v1588_v1 = vpop.permute.xlu1 %1587 }
 0x198   : > { %v992_v11 = vmul.f32 %v928_v0, %v4224_v62  ;;  %v993_v59 = vmul.f32 %v929_v27, %v4228_v33  ;;  %v1361_v58 = vmul.f32 0.5, %v1297_v29  ;;  %v1358_v61 = vmul.f32 0.5, %v1294_v52  ;;  %v4246_v10 = vpop.f32.mrb[49].mxu0 }
 0x199   : > { %v1118_v22 = vadd.f32 %v1054_v15, %v4204_v50  ;;  %v1055_v35 = vmul.f32 0.044715, %v991_v46  ;;  %v1423_v19 = vmul.f32 %v1359_v39, %v3998_v63  ;;  %v1360_v53 = vmul.f32 0.5, %v1296_v13  ;;  %v4250_v16 = vpop.f32.mrb[50].mxu0 }
 0x19a   : > { %v1056_v26 = vmul.f32 0.044715, %v992_v11  ;;  %v1057_v45 = vmul.f32 0.044715, %v993_v59  ;;  %v1425_v47 = vmul.f32 %v1361_v58, %v4007_v42  ;;  %v1422_v34 = vmul.f32 %v1358_v61, %v3991_v44  ;;  %v4254_v2 = vpop.f32.mrb[51].mxu0 }
 0x19b   : > { %v1182_v0 = vmul.f32 0.7978846, %v1118_v22  ;;  %v1119_v27 = vadd.f32 %v1055_v35, %v4218_v60  ;;  %v1711_v29 = vmul.f32 %v1583_v38, %v1423_v19  ;;  %v1424_v52 = vmul.f32 %v1360_v53, %v4004_v31 }
 0x19c   : > { %v4258_v63 = vpop.eup %3325  ;;  %v1120_v15 = vadd.f32 %v1056_v26, %v4224_v62  ;;  %v1121_v46 = vadd.f32 %v1057_v45, %v4228_v33  ;;  %v1713_v39 = vmul.f32 %v1588_v1, %v1425_v47  ;;  %v1710_v13 = vmul.f32 %v1583_v38, %v1422_v34 }
 0x19d   : > { %v4262_v42 = vpop.eup %3327  ;;  %3333 = vtanh.f32 %v1182_v0  ;;  %v1183_v44 = vmul.f32 0.7978846, %v1119_v27  ;;  %v1712_v11 = vmul.f32 %v1588_v1, %v1424_v52  ;;  %v4266_v59 = vadd.f32 %v4154_v41, %v3822_v24 }
 0x19e   : > { %v4268_v58 = vpop.eup %3329  ;;  %v1184_v31 = vmul.f32 0.7978846, %v1120_v15  ;;  %v1185_v61 = vmul.f32 0.7978846, %v1121_v46  ;;  %v1765_v22 = vpack.c.bf16 %v1713_v39, %v1711_v29  ;;  %v4272_v35 = vadd.f32 %v4164_v37, %v3824_v25 }
 0x19f   : > { %v4274_v19 = vpop.eup %3331  ;;  %3335 = vtanh.f32 %v1183_v44  ;;  %v1764_v53 = vpack.c.bf16 %v1712_v11, %v1710_v13  ;;  %v930_v38 = vmul.f32 %v4266_v59, %v4266_v59  ;;  %v4280_v41 = vadd.f32 %v4173_v14, %v3822_v24  ;;  %v4282_v26 = vpop.f32.mrb[52].mxu0 }
 0x1a0   : > { %3337 = vtanh.f32 %v1184_v31  ;;  %1986 = vmatprep.mubr.bf16.mxu1 %v1765_v22  ;;  %v931_v45 = vmul.f32 %v4272_v35, %v4272_v35  ;;  %v4288_v37 = vadd.f32 %v4179_v20, %v3824_v25  ;;  %v1299_v47 = vadd.f32 1.0, %v4142_v55  ;;  %v4291_v34 = vpop.f32.mrb[53].mxu0  ;;  %v1593_v22 = vpop.permute.xlu0 %1592 }
 0x1a1   : > { %3339 = vtanh.f32 %v1185_v61  ;;  %1987 = vmatmul.mubr.bf16.gmra.mrb[20].mxu1 %v1764_v53  ;;  %v994_v14 = vmul.f32 %v930_v38, %v4266_v59  ;;  %v932_v1 = vmul.f32 %v4280_v41, %v4280_v41  ;;  %v1301_v0 = vadd.f32 1.0, %v4156_v43  ;;  %v4297_v27 = vpop.f32.mrb[54].mxu0 }
 0x1a2   : > { %v995_v29 = vmul.f32 %v931_v45, %v4272_v35  ;;  %v933_v20 = vmul.f32 %v4288_v37, %v4288_v37  ;;  %v1363_v52 = vmul.f32 0.5, %v1299_v47  ;;  %v1298_v55 = vadd.f32 1.0, %v4138_v8  ;;  %v4303_v15 = vpop.f32.mrb[55].mxu0  ;;  %v1598_v47 = vpop.permute.xlu1 %1597 }
 0x1a3   : > { %v1058_v46 = vmul.f32 0.044715, %v994_v14  ;;  %v996_v39 = vmul.f32 %v932_v1, %v4280_v41  ;;  %v1365_v13 = vmul.f32 0.5, %v1301_v0  ;;  %v1300_v44 = vadd.f32 1.0, %v4148_v30 }
 0x1a4   : > { %v1059_v11 = vmul.f32 0.044715, %v995_v29  ;;  %v997_v43 = vmul.f32 %v933_v20, %v4288_v37  ;;  %v1427_v31 = vmul.f32 %v1363_v52, %v4046_v18  ;;  %v1362_v61 = vmul.f32 0.5, %v1298_v55 }
 0x1a5   : > { %v1122_v53 = vadd.f32 %v1058_v46, %v4266_v59  ;;  %v1060_v38 = vmul.f32 0.044715, %v996_v39  ;;  %v1429_v8 = vmul.f32 %v1365_v13, %v4058_v23  ;;  %v1364_v45 = vmul.f32 0.5, %v1300_v44 }
 0x1a6   : > { %v1123_v14 = vadd.f32 %v1059_v11, %v4272_v35  ;;  %v1061_v1 = vmul.f32 0.044715, %v997_v43  ;;  %v1715_v0 = vmul.f32 %v1593_v22, %v1427_v31  ;;  %v1426_v30 = vmul.f32 %v1362_v61, %v4041_v21 }
 0x1a7   : > { %v4313_v29 = vpop.eup %3333  ;;  %v1186_v20 = vmul.f32 0.7978846, %v1122_v53  ;;  %v1124_v18 = vadd.f32 %v1060_v38, %v4280_v41  ;;  %v1717_v52 = vmul.f32 %v1598_v47, %v1429_v8  ;;  %v1428_v55 = vmul.f32 %v1364_v45, %v4053_v12  ;;  %v4317_v46 = vpop.f32.mrb[56].mxu0 }
 0x1a8   : > { %v1187_v39 = vmul.f32 0.7978846, %v1123_v14  ;;  %v1125_v23 = vadd.f32 %v1061_v1, %v4288_v37  ;;  %v1714_v13 = vmul.f32 %v1593_v22, %v1426_v30  ;;  %v4322_v44 = vadd.f32 %v4193_v36, %v3822_v24  ;;  %v4324_v11 = vpop.f32.mrb[57].mxu0 }
 0x1a9   : > { %v4326_v21 = vpop.eup %3335  ;;  %3341 = vtanh.f32 %v1186_v20  ;;  %v1188_v43 = vmul.f32 0.7978846, %v1124_v18  ;;  %v1767_v31 = vpack.c.bf16 %v1717_v52, %v1715_v0  ;;  %v1716_v61 = vmul.f32 %v1598_v47, %v1428_v55  ;;  %v4328_v53 = vpop.f32.mrb[58].mxu0 }
 0x1aa   : > { %v4330_v12 = vpop.eup %3337  ;;  %3343 = vtanh.f32 %v1187_v39  ;;  %v1189_v38 = vmul.f32 0.7978846, %v1125_v23  ;;  %v934_v22 = vmul.f32 %v4322_v44, %v4322_v44  ;;  %v4336_v36 = vadd.f32 %v4199_v57, %v3824_v25  ;;  %v4338_v8 = vpop.f32.mrb[59].mxu0 }
 0x1ab   : > { %v4340_v45 = vpop.eup %3339  ;;  %3345 = vtanh.f32 %v1188_v43  ;;  %1994 = vmatprep.mubr.bf16.mxu1 %v1767_v31  ;;  %v1766_v47 = vpack.c.bf16 %v1716_v61, %v1714_v13  ;;  %v4344_v14 = vadd.f32 %v4206_v32, %v3822_v24  ;;  %v4348_v1 = vadd.f32 %v4210_v40, %v3824_v25 }
 0x1ac   : > { %3347 = vtanh.f32 %v1189_v38  ;;  %v998_v0 = vmul.f32 %v934_v22, %v4322_v44  ;;  %v935_v57 = vmul.f32 %v4336_v36, %v4336_v36  ;;  %v1303_v30 = vadd.f32 1.0, %v4208_v7 }
 0x1ad   : > { %1995 = vmatmul.mubr.bf16.gmra.mrb[24].mxu1 %v1766_v47  ;;  %v936_v20 = vmul.f32 %v4344_v14, %v4344_v14  ;;  %v937_v32 = vmul.f32 %v4348_v1, %v4348_v1  ;;  %v1305_v18 = vadd.f32 1.0, %v4220_v5  ;;  %v1302_v40 = vadd.f32 1.0, %v4195_v49 }
 0x1ae   : > { %v1062_v52 = vmul.f32 0.044715, %v998_v0  ;;  %v999_v55 = vmul.f32 %v935_v57, %v4336_v36  ;;  %v1367_v39 = vmul.f32 0.5, %v1303_v30  ;;  %v1304_v23 = vadd.f32 1.0, %v4212_v48  ;;  %v1603_v0 = vpop.permute.xlu0 %1602 }
 0x1af   : > { %v1000_v13 = vmul.f32 %v936_v20, %v4344_v14  ;;  %v1001_v7 = vmul.f32 %v937_v32, %v4348_v1  ;;  %v1369_v43 = vmul.f32 0.5, %v1305_v18  ;;  %v1366_v31 = vmul.f32 0.5, %v1302_v40  ;;  %v4364_v61 = vpop.f32.mrb[60].mxu0  ;;  %v1608_v18 = vpop.permute.xlu1 %1607 }
 0x1b0   : > { %4690 = vst [vmem:[#allocation9_spill] sm:$0xff] %v4364_v61  ;;  %v1126_v38 = vadd.f32 %v1062_v52, %v4322_v44  ;;  %v1063_v22 = vmul.f32 0.044715, %v999_v55  ;;  %v1431_v5 = vmul.f32 %v1367_v39, %v4100_v56  ;;  %v1368_v49 = vmul.f32 0.5, %v1304_v23  ;;  %v4368_v47 = vpop.f32.mrb[61].mxu0 }
 0x1b1   : > { %v1064_v57 = vmul.f32 0.044715, %v1000_v13  ;;  %v1065_v30 = vmul.f32 0.044715, %v1001_v7  ;;  %v1433_v48 = vmul.f32 %v1369_v43, %v4108_v28  ;;  %v1430_v20 = vmul.f32 %v1366_v31, %v4089_v54  ;;  %v4372_v32 = vpop.f32.mrb[62].mxu0 }
 0x1b2   : > { %v1190_v40 = vmul.f32 0.7978846, %v1126_v38  ;;  %v1127_v61 = vadd.f32 %v1063_v22, %v4336_v36  ;;  %v1719_v52 = vmul.f32 %v1603_v0, %v1431_v5  ;;  %v1432_v55 = vmul.f32 %v1368_v49, %v4105_v3  ;;  %v4376_v56 = vpop.f32.mrb[63].mxu0 }
 0x1b3   : > { %v4378_v39 = vpop.eup %3341  ;;  %v1128_v23 = vadd.f32 %v1064_v57, %v4344_v14  ;;  %v1129_v13 = vadd.f32 %v1065_v30, %v4348_v1  ;;  %v1721_v28 = vmul.f32 %v1608_v18, %v1433_v48  ;;  %v1718_v7 = vmul.f32 %v1603_v0, %v1430_v20 }
 0x1b4   : > { %v4382_v54 = vpop.eup %3343  ;;  %3349 = vtanh.f32 %v1190_v40  ;;  %v1191_v43 = vmul.f32 0.7978846, %v1127_v61  ;;  %v1720_v31 = vmul.f32 %v1608_v18, %v1432_v55  ;;  %v4386_v38 = vadd.f32 %v4242_v9, %v3822_v24 }
 0x1b5   : > { %v4388_v3 = vpop.eup %3345  ;;  %v1192_v22 = vmul.f32 0.7978846, %v1128_v23  ;;  %v1193_v5 = vmul.f32 0.7978846, %v1129_v13  ;;  %v1769_v49 = vpack.c.bf16 %v1721_v28, %v1719_v52  ;;  %v4392_v57 = vadd.f32 %v4246_v10, %v3824_v25 }
 0x1b6   : > { %v4394_v30 = vpop.eup %3347  ;;  %3351 = vtanh.f32 %v1191_v43  ;;  %v1768_v0 = vpack.c.bf16 %v1720_v31, %v1718_v7  ;;  %v938_v61 = vmul.f32 %v4386_v38, %v4386_v38  ;;  %v4400_v9 = vadd.f32 %v4250_v16, %v3822_v24 }
 0x1b7   : > { %3353 = vtanh.f32 %v1192_v22  ;;  %2002 = vmatprep.mubr.bf16.mxu1 %v1769_v49  ;;  %v939_v48 = vmul.f32 %v4392_v57, %v4392_v57  ;;  %v4406_v10 = vadd.f32 %v4254_v2, %v3824_v25  ;;  %v1307_v20 = vadd.f32 1.0, %v4262_v42 }
 0x1b8   : > { %3355 = vtanh.f32 %v1193_v5  ;;  %2003 = vmatmul.mubr.bf16.gmra.mrb[28].mxu1 %v1768_v0  ;;  %v1002_v18 = vmul.f32 %v938_v61, %v4386_v38  ;;  %v940_v40 = vmul.f32 %v4400_v9, %v4400_v9  ;;  %v1309_v16 = vadd.f32 1.0, %v4274_v19  ;;  %v1613_v5 = vpop.permute.xlu0 %1612 }
 0x1b9   : > { %v1003_v52 = vmul.f32 %v939_v48, %v4392_v57  ;;  %v941_v55 = vmul.f32 %v4406_v10, %v4406_v10  ;;  %v1371_v23 = vmul.f32 0.5, %v1307_v20  ;;  %v1306_v2 = vadd.f32 1.0, %v4258_v63  ;;  %v1618_v63 = vpop.permute.xlu1 %1617 }
 0x1ba   : > { %v1066_v13 = vmul.f32 0.044715, %v1002_v18  ;;  %v1004_v42 = vmul.f32 %v940_v40, %v4400_v9  ;;  %v1373_v28 = vmul.f32 0.5, %v1309_v16  ;;  %v1308_v7 = vadd.f32 1.0, %v4268_v58 }
 0x1bb   : > { %v1067_v43 = vmul.f32 0.044715, %v1003_v52  ;;  %v1005_v31 = vmul.f32 %v941_v55, %v4406_v10  ;;  %v1435_v22 = vmul.f32 %v1371_v23, %v4152_v6  ;;  %v1370_v19 = vmul.f32 0.5, %v1306_v2 }
 0x1bc   : > { %v1130_v49 = vadd.f32 %v1066_v13, %v4386_v38  ;;  %v1068_v0 = vmul.f32 0.044715, %v1004_v42  ;;  %v1437_v61 = vmul.f32 %v1373_v28, %v4170_v51  ;;  %v1372_v48 = vmul.f32 0.5, %v1308_v7 }
 0x1bd   : > { %v1131_v20 = vadd.f32 %v1067_v43, %v4392_v57  ;;  %v1069_v18 = vmul.f32 0.044715, %v1005_v31  ;;  %v1723_v40 = vmul.f32 %v1613_v5, %v1435_v22  ;;  %v1434_v58 = vmul.f32 %v1370_v19, %v4146_v17 }
 0x1be   : > { %v4425_v16 = vpop.eup %3349  ;;  %v1194_v52 = vmul.f32 0.7978846, %v1130_v49  ;;  %v1132_v6 = vadd.f32 %v1068_v0, %v4400_v9  ;;  %v1725_v55 = vmul.f32 %v1618_v63, %v1437_v61  ;;  %v1436_v23 = vmul.f32 %v1372_v48, %v4162_v4 }
 0x1bf   : > { %v1195_v2 = vmul.f32 0.7978846, %v1131_v20  ;;  %v1133_v13 = vadd.f32 %v1069_v18, %v4406_v10  ;;  %v1722_v51 = vmul.f32 %v1613_v5, %v1434_v58  ;;  %v4432_v42 = vadd.f32 %v4282_v26, %v3822_v24 }
 0x1c0   : > { %v4434_v28 = vpop.eup %3351  ;;  %3357 = vtanh.f32 %v1194_v52  ;;  %v1196_v17 = vmul.f32 0.7978846, %v1132_v6  ;;  %v1771_v7 = vpack.c.bf16 %v1725_v55, %v1723_v40  ;;  %v1724_v43 = vmul.f32 %v1618_v63, %v1436_v23 }
 0x1c1   : > { %v4436_v31 = vpop.eup %3353  ;;  %3359 = vtanh.f32 %v1195_v2  ;;  %v1197_v22 = vmul.f32 0.7978846, %v1133_v13  ;;  %v942_v4 = vmul.f32 %v4432_v42, %v4432_v42  ;;  %v4442_v19 = vadd.f32 %v4291_v34, %v3824_v25 }
 0x1c2   : > { %v4444_v5 = vpop.eup %3355  ;;  %3361 = vtanh.f32 %v1196_v17  ;;  %2010 = vmatprep.mubr.bf16.mxu1 %v1771_v7  ;;  %v1770_v26 = vpack.c.bf16 %v1724_v43, %v1722_v51  ;;  %v4448_v49 = vadd.f32 %v4297_v27, %v3822_v24  ;;  %v4452_v0 = vadd.f32 %v4303_v15, %v3824_v25  ;;  %v1623_v17 = vpop.permute.xlu0 %1622 }
 0x1c3   : > { %3363 = vtanh.f32 %v1197_v22  ;;  %v1006_v61 = vmul.f32 %v942_v4, %v4432_v42  ;;  %v943_v34 = vmul.f32 %v4442_v19, %v4442_v19  ;;  %v1311_v48 = vadd.f32 1.0, %v4326_v21 }
 0x1c4   : > { %2011 = vmatmul.mubr.bf16.gmra.mrb[32].mxu1 %v1770_v26  ;;  %v944_v63 = vmul.f32 %v4448_v49, %v4448_v49  ;;  %v945_v27 = vmul.f32 %v4452_v0, %v4452_v0  ;;  %v1313_v20 = vadd.f32 1.0, %v4340_v45  ;;  %v1310_v15 = vadd.f32 1.0, %v4313_v29 }
 0x1c5   : > { %v1070_v18 = vmul.f32 0.044715, %v1006_v61  ;;  %v1007_v40 = vmul.f32 %v943_v34, %v4442_v19  ;;  %v1375_v58 = vmul.f32 0.5, %v1311_v48  ;;  %v1312_v52 = vadd.f32 1.0, %v4330_v12  ;;  %v1628_v12 = vpop.permute.xlu1 %1627 }
 0x1c6   : > { %v1008_v6 = vmul.f32 %v944_v63, %v4448_v49  ;;  %v1009_v21 = vmul.f32 %v945_v27, %v4452_v0  ;;  %v1377_v55 = vmul.f32 0.5, %v1313_v20  ;;  %v1374_v23 = vmul.f32 0.5, %v1310_v15 }
 0x1c7   : > { %v1134_v2 = vadd.f32 %v1070_v18, %v4432_v42  ;;  %v1071_v13 = vmul.f32 0.044715, %v1007_v40  ;;  %v1439_v51 = vmul.f32 %v1375_v58, %v4218_v60  ;;  %v1376_v45 = vmul.f32 0.5, %v1312_v52 }
 0x1c8   : > { %v1072_v29 = vmul.f32 0.044715, %v1008_v6  ;;  %v1073_v7 = vmul.f32 0.044715, %v1009_v21  ;;  %v1441_v43 = vmul.f32 %v1377_v55, %v4228_v33  ;;  %v1438_v22 = vmul.f32 %v1374_v23, %v4204_v50 }
 0x1c9   : > { %v1198_v4 = vmul.f32 0.7978846, %v1134_v2  ;;  %v1135_v26 = vadd.f32 %v1071_v13, %v4442_v19  ;;  %v1727_v61 = vmul.f32 %v1623_v17, %v1439_v51  ;;  %v1440_v34 = vmul.f32 %v1376_v45, %v4224_v62 }
 0x1ca   : > { %v4474_v48 = vpop.eup %3357  ;;  %v1136_v63 = vadd.f32 %v1072_v29, %v4448_v49  ;;  %v1137_v60 = vadd.f32 %v1073_v7, %v4452_v0  ;;  %v1729_v27 = vmul.f32 %v1628_v12, %v1441_v43  ;;  %v1726_v20 = vmul.f32 %v1623_v17, %v1438_v22 }
 0x1cb   : > { %v4478_v15 = vpop.eup %3359  ;;  %3365 = vtanh.f32 %v1198_v4  ;;  %v1199_v33 = vmul.f32 0.7978846, %v1135_v26  ;;  %v1728_v50 = vmul.f32 %v1628_v12, %v1440_v34  ;;  %v4482_v18 = vadd.f32 %v4317_v46, %v3822_v24  ;;  %v1633_v34 = vpop.permute.xlu0 %1632 }
 0x1cc   : > { %v4484_v40 = vpop.eup %3361  ;;  %v1200_v62 = vmul.f32 0.7978846, %v1136_v63  ;;  %v1201_v58 = vmul.f32 0.7978846, %v1137_v60  ;;  %v1773_v52 = vpack.c.bf16 %v1729_v27, %v1727_v61  ;;  %v4488_v6 = vadd.f32 %v4324_v11, %v3824_v25 }
 0x1cd   : > { %v4490_v21 = vpop.eup %3363  ;;  %3367 = vtanh.f32 %v1199_v33  ;;  %v1772_v55 = vpack.c.bf16 %v1728_v50, %v1726_v20  ;;  %v946_v23 = vmul.f32 %v4482_v18, %v4482_v18  ;;  %v4496_v46 = vadd.f32 %v4328_v53, %v3822_v24 }
 0x1ce   : > { %3369 = vtanh.f32 %v1200_v62  ;;  %2018 = vmatprep.mubr.bf16.mxu1 %v1773_v52  ;;  %v947_v2 = vmul.f32 %v4488_v6, %v4488_v6  ;;  %v4502_v11 = vadd.f32 %v4338_v8, %v3824_v25  ;;  %v1315_v13 = vadd.f32 1.0, %v4382_v54 }
 0x1cf   : > { %3371 = vtanh.f32 %v1201_v58  ;;  %2019 = vmatmul.mubr.bf16.gmra.mrb[36].mxu1 %v1772_v55  ;;  %v1010_v51 = vmul.f32 %v946_v23, %v4482_v18  ;;  %v948_v45 = vmul.f32 %v4496_v46, %v4496_v46  ;;  %v1317_v53 = vadd.f32 1.0, %v4394_v30 }
 0x1d0   : > { %v1011_v17 = vmul.f32 %v947_v2, %v4488_v6  ;;  %v949_v29 = vmul.f32 %v4502_v11, %v4502_v11  ;;  %v1379_v7 = vmul.f32 0.5, %v1315_v13  ;;  %v1314_v8 = vadd.f32 1.0, %v4378_v39  ;;  %v1638_v39 = vpop.permute.xlu1 %1637 }
 0x1d1   : > { %v1074_v43 = vmul.f32 0.044715, %v1010_v51  ;;  %v1012_v54 = vmul.f32 %v948_v45, %v4496_v46  ;;  %v1381_v22 = vmul.f32 0.5, %v1317_v53  ;;  %v1316_v12 = vadd.f32 1.0, %v4388_v3  ;;  %v4691_v51 = vld [vmem:[#allocation9_spill] sm:$0xff] }
 0x1d2   : > { %v1075_v4 = vmul.f32 0.044715, %v1011_v17  ;;  %v1013_v26 = vmul.f32 %v949_v29, %v4502_v11  ;;  %v1443_v61 = vmul.f32 %v1379_v7, %v4272_v35  ;;  %v1378_v30 = vmul.f32 0.5, %v1314_v8 }
 0x1d3   : > { %v1138_v63 = vadd.f32 %v1074_v43, %v4482_v18  ;;  %v1076_v60 = vmul.f32 0.044715, %v1012_v54  ;;  %v1445_v27 = vmul.f32 %v1381_v22, %v4288_v37  ;;  %v1380_v20 = vmul.f32 0.5, %v1316_v12 }
 0x1d4   : > { %v1139_v33 = vadd.f32 %v1075_v4, %v4488_v6  ;;  %v1077_v50 = vmul.f32 0.044715, %v1013_v26  ;;  %v1731_v62 = vmul.f32 %v1633_v34, %v1443_v61  ;;  %v1442_v3 = vmul.f32 %v1378_v30, %v4266_v59 }
 0x1d5   : > { %v4521_v58 = vpop.eup %3365  ;;  %v1202_v52 = vmul.f32 0.7978846, %v1138_v63  ;;  %v1140_v35 = vadd.f32 %v1076_v60, %v4496_v46  ;;  %v1733_v55 = vmul.f32 %v1638_v39, %v1445_v27  ;;  %v1444_v23 = vmul.f32 %v1380_v20, %v4280_v41  ;;  %v1643_v27 = vpop.permute.xlu0 %1642 }
 0x1d6   : > { %v1203_v2 = vmul.f32 0.7978846, %v1139_v33  ;;  %v1141_v13 = vadd.f32 %v1077_v50, %v4502_v11  ;;  %v1730_v37 = vmul.f32 %v1633_v34, %v1442_v3  ;;  %v4528_v45 = vadd.f32 %v4691_v51, %v3822_v24  ;;  %v1648_v20 = vpop.permute.xlu1 %1647 }
 0x1d7   : > { %v4530_v53 = vpop.eup %3367  ;;  %3373 = vtanh.f32 %v1202_v52  ;;  %v1204_v59 = vmul.f32 0.7978846, %v1140_v35  ;;  %v1775_v17 = vpack.c.bf16 %v1733_v55, %v1731_v62  ;;  %v1732_v29 = vmul.f32 %v1638_v39, %v1444_v23 }
 0x1d8   : > { %v4532_v7 = vpop.eup %3369  ;;  %3375 = vtanh.f32 %v1203_v2  ;;  %v1205_v8 = vmul.f32 0.7978846, %v1141_v13  ;;  %v950_v41 = vmul.f32 %v4528_v45, %v4528_v45  ;;  %v4538_v43 = vadd.f32 %v4368_v47, %v3824_v25 }
 0x1d9   : > { %v4540_v54 = vpop.eup %3371  ;;  %3377 = vtanh.f32 %v1204_v59  ;;  %2026 = vmatprep.mubr.bf16.mxu1 %v1775_v17  ;;  %v1774_v22 = vpack.c.bf16 %v1732_v29, %v1730_v37  ;;  %v4544_v12 = vadd.f32 %v4372_v32, %v3822_v24  ;;  %v4548_v4 = vadd.f32 %v4376_v56, %v3824_v25 }
 0x1da   : > { %3379 = vtanh.f32 %v1205_v8  ;;  %v1014_v26 = vmul.f32 %v950_v41, %v4528_v45  ;;  %v951_v47 = vmul.f32 %v4538_v43, %v4538_v43  ;;  %v1319_v61 = vadd.f32 1.0, %v4434_v28 }
 0x1db   : > { %2027 = vmatmul.mubr.bf16.gmra.mrb[40].mxu1 %v1774_v22  ;;  %v952_v30 = vmul.f32 %v4544_v12, %v4544_v12  ;;  %v953_v24 = vmul.f32 %v4548_v4, %v4548_v4  ;;  %v1321_v32 = vadd.f32 1.0, %v4444_v5  ;;  %v1318_v25 = vadd.f32 1.0, %v4425_v16 }
 0x1dc   : > { %v1078_v56 = vmul.f32 0.044715, %v1014_v26  ;;  %v1015_v34 = vmul.f32 %v951_v47, %v4538_v43  ;;  %v1383_v63 = vmul.f32 0.5, %v1319_v61  ;;  %v1320_v60 = vadd.f32 1.0, %v4436_v31  ;;  %v1653_v26 = vpop.permute.xlu0 %1652  ;;  %v1658_v47 = vpop.permute.xlu1 %1657 }
 0x1dd   : > { %v1016_v28 = vmul.f32 %v952_v30, %v4544_v12  ;;  %v1017_v39 = vmul.f32 %v953_v24, %v4548_v4  ;;  %v1385_v33 = vmul.f32 0.5, %v1321_v32  ;;  %v1382_v50 = vmul.f32 0.5, %v1318_v25 }
 0x1de   : > { %v1142_v62 = vadd.f32 %v1078_v56, %v4528_v45  ;;  %v1079_v3 = vmul.f32 0.044715, %v1015_v34  ;;  %v1447_v5 = vmul.f32 %v1383_v63, %v4336_v36  ;;  %v1384_v16 = vmul.f32 0.5, %v1320_v60 }
 0x1df   : > { %v1080_v52 = vmul.f32 0.044715, %v1016_v28  ;;  %v1081_v35 = vmul.f32 0.044715, %v1017_v39  ;;  %v1449_v55 = vmul.f32 %v1385_v33, %v4348_v1  ;;  %v1446_v31 = vmul.f32 %v1382_v50, %v4322_v44 }
 0x1e0   : > { %v1206_v23 = vmul.f32 0.7978846, %v1142_v62  ;;  %v1143_v2 = vadd.f32 %v1079_v3, %v4538_v43  ;;  %v1735_v13 = vmul.f32 %v1643_v27, %v1447_v5  ;;  %v1448_v37 = vmul.f32 %v1384_v16, %v4344_v14  ;;  %v1668_v5 = vpop.permute.xlu1 %1667 }
 0x1e1   : > { %v3374_v51 = vpop.eup %3373  ;;  %v1144_v59 = vadd.f32 %v1080_v52, %v4544_v12  ;;  %v1145_v17 = vadd.f32 %v1081_v35, %v4548_v4  ;;  %v1737_v29 = vmul.f32 %v1648_v20, %v1449_v55  ;;  %v1734_v36 = vmul.f32 %v1643_v27, %v1446_v31 }
 0x1e2   : > { %v3376_v8 = vpop.eup %3375  ;;  %3381 = vtanh.f32 %v1206_v23  ;;  %v1207_v41 = vmul.f32 0.7978846, %v1143_v2  ;;  %v1736_v22 = vmul.f32 %v1648_v20, %v1448_v37  ;;  %v1323_v1 = vadd.f32 1.0, %v4478_v15 }
 0x1e3   : > { %v3378_v44 = vpop.eup %3377  ;;  %v1208_v61 = vmul.f32 0.7978846, %v1144_v59  ;;  %v1209_v30 = vmul.f32 0.7978846, %v1145_v17  ;;  %v1777_v24 = vpack.c.bf16 %v1737_v29, %v1735_v13  ;;  %v1325_v14 = vadd.f32 1.0, %v4490_v21 }
 0x1e4   : > { %v3380_v32 = vpop.eup %3379  ;;  %3383 = vtanh.f32 %v1207_v41  ;;  %v1776_v25 = vpack.c.bf16 %v1736_v22, %v1734_v36  ;;  %v1387_v56 = vmul.f32 0.5, %v1323_v1  ;;  %v1322_v34 = vadd.f32 1.0, %v4474_v48 }
 0x1e5   : > { %3385 = vtanh.f32 %v1208_v61  ;;  %2034 = vmatprep.mubr.bf16.mxu1 %v1777_v24  ;;  %v1389_v63 = vmul.f32 0.5, %v1325_v14  ;;  %v1324_v60 = vadd.f32 1.0, %v4484_v40  ;;  %v1327_v15 = vadd.f32 1.0, %v4530_v53  ;;  %v1663_v53 = vpop.permute.xlu0 %1662 }
 0x1e6   : > { %3387 = vtanh.f32 %v1209_v30  ;;  %2035 = vmatmul.mubr.bf16.gmra.mrb[44].mxu1 %v1776_v25  ;;  %v1451_v27 = vmul.f32 %v1387_v56, %v4392_v57  ;;  %v1386_v20 = vmul.f32 0.5, %v1322_v34  ;;  %v1329_v21 = vadd.f32 1.0, %v4540_v54 }
 0x1e7   : > { %v1453_v28 = vmul.f32 %v1389_v63, %v4406_v10  ;;  %v1388_v39 = vmul.f32 0.5, %v1324_v60  ;;  %v1391_v33 = vmul.f32 0.5, %v1327_v15  ;;  %v1326_v48 = vadd.f32 1.0, %v4521_v58 }
 0x1e8   : > { %v1739_v50 = vmul.f32 %v1653_v26, %v1451_v27  ;;  %v1450_v62 = vmul.f32 %v1386_v20, %v4386_v38  ;;  %v1393_v3 = vmul.f32 0.5, %v1329_v21  ;;  %v1328_v40 = vadd.f32 1.0, %v4532_v7 }
 0x1e9   : > { %v1741_v16 = vmul.f32 %v1658_v47, %v1453_v28  ;;  %v1452_v57 = vmul.f32 %v1388_v39, %v4400_v9  ;;  %v1455_v52 = vmul.f32 %v1391_v33, %v4442_v19  ;;  %v1390_v54 = vmul.f32 0.5, %v1326_v48 }
 0x1ea   : > { %v1738_v35 = vmul.f32 %v1653_v26, %v1450_v62  ;;  %v1457_v10 = vmul.f32 %v1393_v3, %v4452_v0  ;;  %v1392_v55 = vmul.f32 0.5, %v1328_v40  ;;  %v1331_v31 = vadd.f32 1.0, %v3376_v8 }
 0x1eb   : > { %v1779_v58 = vpack.c.bf16 %v1741_v16, %v1739_v50  ;;  %v1740_v23 = vmul.f32 %v1658_v47, %v1452_v57  ;;  %v1743_v2 = vmul.f32 %v1663_v53, %v1455_v52  ;;  %v1454_v38 = vmul.f32 %v1390_v54, %v4432_v42  ;;  %v1673_v47 = vpop.permute.xlu0 %1672  ;;  %v1678_v42 = vpop.permute.xlu1 %1677 }
 0x1ec   : > { %v3382_v13 = vpop.eup %3381  ;;  %v1745_v7 = vmul.f32 %v1668_v5, %v1457_v10  ;;  %v1456_v37 = vmul.f32 %v1392_v55, %v4448_v49  ;;  %v1333_v59 = vadd.f32 1.0, %v3380_v32  ;;  %v1395_v17 = vmul.f32 0.5, %v1331_v31  ;;  %v1467_v10 = vld [vmem:[#allocation2 + $0x8] sm:$0xff] }
 0x1ed   : > { %2042 = vmatprep.mubr.bf16.mxu1 %v1779_v58  ;;  %v1778_v9 = vpack.c.bf16 %v1740_v23, %v1738_v35  ;;  %v1742_v19 = vmul.f32 %v1663_v53, %v1454_v38  ;;  %v1330_v29 = vadd.f32 1.0, %v3374_v51  ;;  %v1332_v36 = vadd.f32 1.0, %v3378_v44 }
 0x1ee   : > { %v3384_v41 = vpop.eup %3383  ;;  %v1781_v0 = vpack.c.bf16 %v1745_v7, %v1743_v2  ;;  %v1744_v22 = vmul.f32 %v1668_v5, %v1456_v37  ;;  %v1397_v8 = vmul.f32 0.5, %v1333_v59  ;;  %v1459_v1 = vmul.f32 %v1395_v17, %v4488_v6  ;;  %v1468_v17 = vld [vmem:[#allocation2 + $0x10] sm:$0xff] }
 0x1ef   : > { %v3386_v26 = vpop.eup %3385  ;;  %2043 = vmatmul.mubr.bf16.gmra.mrb[48].mxu1 %v1778_v9  ;;  %v1394_v61 = vmul.f32 0.5, %v1330_v29  ;;  %v1396_v30 = vmul.f32 0.5, %v1332_v36  ;;  %v1335_v49 = vadd.f32 1.0, %v3384_v41  ;;  %v1334_v24 = vadd.f32 1.0, %v3382_v13  ;;  %v1683_v50 = vpop.permute.xlu0 %1682  ;;  %v1469_v41 = vld [vmem:[#allocation2 + $0x18] sm:$0xff] }
 0x1f0   : > { %v3388_v14 = vpop.eup %3387  ;;  %2050 = vmatprep.mubr.bf16.mxu1 %v1781_v0  ;;  %v1780_v32 = vpack.c.bf16 %v1744_v22, %v1742_v19  ;;  %v1461_v51 = vmul.f32 %v1397_v8, %v4502_v11  ;;  %v1336_v44 = vadd.f32 1.0, %v3386_v26  ;;  %v1747_v63 = vmul.f32 %v1673_v47, %v1459_v1 }
 0x1f1   : > { %v1458_v25 = vmul.f32 %v1394_v61, %v4482_v18  ;;  %v1460_v56 = vmul.f32 %v1396_v30, %v4496_v46  ;;  %v1337_v34 = vadd.f32 1.0, %v3388_v14  ;;  %v1399_v6 = vmul.f32 0.5, %v1335_v49  ;;  %v1688_v18 = vpop.permute.xlu1 %1687 }
 0x1f2   : > { %v1749_v60 = vmul.f32 %v1678_v42, %v1461_v51  ;;  %v1398_v15 = vmul.f32 0.5, %v1334_v24  ;;  %v1400_v27 = vmul.f32 0.5, %v1336_v44  ;;  %v1470_v24 = vld [vmem:[#allocation2 + $0x20] sm:$0xff] }
 0x1f3   : > { %v1746_v20 = vmul.f32 %v1673_v47, %v1458_v25  ;;  %v1748_v21 = vmul.f32 %v1678_v42, %v1460_v56  ;;  %v1401_v28 = vmul.f32 0.5, %v1337_v34  ;;  %v1463_v39 = vmul.f32 %v1399_v6, %v4538_v43  ;;  %v4601_v43 = vld [vmem:[%s410_s14] ss:$0 sm:$0xff]  ;;  %v2210_v35 = vpop.permute.xlu0 %2209  ;;  %v1471_v25 = vld [vmem:[#allocation2 + $0x28] sm:$0xff] }
 0x1f4   : > { %v1783_v33 = vpack.c.bf16 %v1749_v60, %v1747_v63  ;;  %v1462_v48 = vmul.f32 %v1398_v15, %v4528_v45  ;;  %v1464_v11 = vmul.f32 %v1400_v27, %v4544_v12  ;;  %v1466_v12 = vld [vmem:[#allocation2] sm:$0xff]  ;;  %v2373_v31 = vmul.f32 %v4601_v43, %v2210_v35 }
 0x1f5   : > { %v1782_v46 = vpack.c.bf16 %v1748_v21, %v1746_v20  ;;  %v1465_v62 = vmul.f32 %v1401_v28, %v4548_v4  ;;  %v1751_v53 = vmul.f32 %v1683_v50, %v1463_v39  ;;  %v2215_v2 = vpop.permute.xlu1 %2214  ;;  %v1472_v39 = vld [vmem:[#allocation2 + $0x30] sm:$0xff] }
 0x1f6   : > { %v1750_v3 = vmul.f32 %v1683_v50, %v1462_v48  ;;  %v1752_v40 = vmul.f32 %v1688_v18, %v1464_v11  ;;  %v2374_v38 = vmul.f32 %v4601_v43, %v2215_v2 }
 0x1f7   : > { %2051 = vmatmul.mubr.bf16.gmra.mrb[52].mxu1 %v1780_v32  ;;  %v1753_v5 = vmul.f32 %v1688_v18, %v1465_v62  ;;  %v2220_v36 = vpop.permute.xlu0 %2219  ;;  %v1473_v18 = vld [vmem:[#allocation2 + $0x38] sm:$0xff] }
 0x1f8   : > { %2058 = vmatprep.mubr.bf16.mxu1 %v1783_v33  ;;  %v1784_v16 = vpack.c.bf16 %v1752_v40, %v1750_v3  ;;  %v2375_v22 = vmul.f32 %v4601_v43, %v2220_v36 }
 0x1f9   : > { %v1785_v57 = vpack.c.bf16 %v1753_v5, %v1751_v53  ;;  %v2225_v26 = vpop.permute.xlu1 %2224 }
 0x1fa   : > { %v2376_v47 = vmul.f32 %v4601_v43, %v2225_v26 }
 0x1fb   : > { %v2230_v44 = vpop.permute.xlu0 %2229 }
 0x1fc   : > { %v2377_v34 = vmul.f32 %v4601_v43, %v2230_v44 }
 0x1fd   : > { %v2235_v60 = vpop.permute.xlu1 %2234 }
 0x1fe   : > { %v2378_v15 = vmul.f32 %v4601_v43, %v2235_v60 }
 0x1ff   : > { %2059 = vmatmul.mubr.bf16.gmra.mrb[56].mxu1 %v1782_v46  ;;  %v2240_v50 = vpop.permute.xlu0 %2239 }
 0x200   : > { %2066 = vmatprep.mubr.bf16.mxu1 %v1785_v57  ;;  %v2379_v62 = vmul.f32 %v4601_v43, %v2240_v50 }
 0x201   : > { %v2245_v53 = vpop.permute.xlu1 %2244 }
 0x202   : > { %v2380_v5 = vmul.f32 %v4601_v43, %v2245_v53 }
 0x207   : > { %2067 = vmatmul.mubr.bf16.gmra.mrb[60].mxu1 %v1784_v16 }
 0x23c   : > { %v3059_v45 = vpop.f32.mrb[0].mxu1 }
 0x23d   : > { %v3060_v4 = vpop.f32.mrb[1].mxu1 }
 0x23e   : > { %v3061_v52 = vadd.f32 %v3060_v4, %v3059_v45  ;;  %v3062_v54 = vpop.f32.mrb[2].mxu1  ;;  %v1474_v4 = vld [vmem:[#allocation2 + $0x40] sm:$0xff] }
 0x23f   : > { %v3063_v55 = vpop.f32.mrb[3].mxu1 }
 0x240   : > { %v2075_v58 = vadd.f32 %v3061_v52, %v1466_v12  ;;  %v3064_v23 = vadd.f32 %v3063_v55, %v3062_v54  ;;  %v1475_v55 = vld [vmem:[#allocation2 + $0x48] sm:$0xff] }
 0x242   : > { %v2405_v13 = vadd.f32 %v2373_v31, %v2075_v58  ;;  %v2076_v7 = vadd.f32 %v3064_v23, %v1467_v10  ;;  %v2250_v10 = vpop.permute.xlu0 %2249 }
 0x243   : > { %v2381_v58 = vmul.f32 %v4601_v43, %v2250_v10 }
 0x244   : > { %2437 = vst [vmem:[#allocation2] sm:$0xff] %v2405_v13  ;;  %v2406_v37 = vadd.f32 %v2374_v38, %v2076_v7  ;;  %v2255_v38 = vpop.permute.xlu1 %2254 }
 0x245   : > { %v2382_v13 = vmul.f32 %v4601_v43, %v2255_v38 }
 0x246   : > { %2438 = vst [vmem:[#allocation2 + $0x8] sm:$0xff] %v2406_v37  ;;  %v3065_v59 = vpop.f32.mrb[4].mxu1 }
 0x247   : > { %v3066_v9 = vpop.f32.mrb[5].mxu1 }
 0x248   : > { %v3067_v19 = vadd.f32 %v3066_v9, %v3065_v59  ;;  %v3068_v29 = vpop.f32.mrb[6].mxu1  ;;  %v1476_v9 = vld [vmem:[#allocation2 + $0x50] sm:$0xff] }
 0x249   : > { %v3069_v0 = vpop.f32.mrb[7].mxu1 }
 0x24a   : > { %v2077_v8 = vadd.f32 %v3067_v19, %v1468_v17  ;;  %v3070_v1 = vadd.f32 %v3069_v0, %v3068_v29  ;;  %v1477_v0 = vld [vmem:[#allocation2 + $0x58] sm:$0xff] }
 0x24c   : > { %v2407_v42 = vadd.f32 %v2375_v22, %v2077_v8  ;;  %v2078_v61 = vadd.f32 %v3070_v1, %v1469_v41  ;;  %v2260_v41 = vpop.permute.xlu0 %2259 }
 0x24d   : > { %v2383_v8 = vmul.f32 %v4601_v43, %v2260_v41 }
 0x24e   : > { %2439 = vst [vmem:[#allocation2 + $0x10] sm:$0xff] %v2407_v42  ;;  %v2408_v30 = vadd.f32 %v2376_v47, %v2078_v61  ;;  %v2265_v47 = vpop.permute.xlu1 %2264 }
 0x24f   : > { %v2384_v42 = vmul.f32 %v4601_v43, %v2265_v47 }
 0x250   : > { %2440 = vst [vmem:[#allocation2 + $0x18] sm:$0xff] %v2408_v30 }
 0x252   : > { %v3071_v49 = vpop.f32.mrb[8].mxu1 }
 0x253   : > { %v3072_v14 = vpop.f32.mrb[9].mxu1 }
 0x254   : > { %v3073_v32 = vadd.f32 %v3072_v14, %v3071_v49  ;;  %v3074_v51 = vpop.f32.mrb[10].mxu1  ;;  %v1478_v14 = vld [vmem:[#allocation2 + $0x60] sm:$0xff] }
 0x255   : > { %v3075_v56 = vpop.f32.mrb[11].mxu1 }
 0x256   : > { %v2079_v6 = vadd.f32 %v3073_v32, %v1470_v24  ;;  %v3076_v63 = vadd.f32 %v3075_v56, %v3074_v51  ;;  %v1479_v56 = vld [vmem:[#allocation2 + $0x68] sm:$0xff] }
 0x258   : > { %v2409_v27 = vadd.f32 %v2377_v34, %v2079_v6  ;;  %v2080_v20 = vadd.f32 %v3076_v63, %v1471_v25  ;;  %v2270_v25 = vpop.permute.xlu0 %2269 }
 0x259   : > { %v2385_v6 = vmul.f32 %v4601_v43, %v2270_v25 }
 0x25a   : > { %2441 = vst [vmem:[#allocation2 + $0x20] sm:$0xff] %v2409_v27  ;;  %v2410_v21 = vadd.f32 %v2378_v15, %v2080_v20  ;;  %v2275_v15 = vpop.permute.xlu1 %2274 }
 0x25b   : > { %v2386_v27 = vmul.f32 %v4601_v43, %v2275_v15 }
 0x25c   : > { %2442 = vst [vmem:[#allocation2 + $0x28] sm:$0xff] %v2410_v21 }
 0x25d   : > { %v3077_v28 = vpop.f32.mrb[12].mxu1 }
 0x25e   : > { %v3078_v33 = vpop.f32.mrb[13].mxu1 }
 0x25f   : > { %v3079_v48 = vadd.f32 %v3078_v33, %v3077_v28  ;;  %v3080_v11 = vpop.f32.mrb[14].mxu1  ;;  %v1480_v33 = vld [vmem:[#allocation2 + $0x70] sm:$0xff] }
 0x260   : > { %v3081_v46 = vpop.f32.mrb[15].mxu1 }
 0x261   : > { %v2081_v3 = vadd.f32 %v3079_v48, %v1472_v39  ;;  %v3082_v40 = vadd.f32 %v3081_v46, %v3080_v11  ;;  %v1481_v46 = vld [vmem:[#allocation2 + $0x78] sm:$0xff] }
 0x263   : > { %v2411_v16 = vadd.f32 %v2379_v62, %v2081_v3  ;;  %v2082_v57 = vadd.f32 %v3082_v40, %v1473_v18  ;;  %v2280_v18 = vpop.permute.xlu0 %2279 }
 0x264   : > { %v2387_v3 = vmul.f32 %v4601_v43, %v2280_v18 }
 0x265   : > { %2443 = vst [vmem:[#allocation2 + $0x30] sm:$0xff] %v2411_v16  ;;  %v2412_v45 = vadd.f32 %v2380_v5, %v2082_v57  ;;  %v2285_v5 = vpop.permute.xlu1 %2284 }
 0x266   : > { %v2388_v16 = vmul.f32 %v4601_v43, %v2285_v5 }
 0x267   : > { %2444 = vst [vmem:[#allocation2 + $0x38] sm:$0xff] %v2412_v45 }
 0x269   : > { %v3083_v12 = vpop.f32.mrb[16].mxu1 }
 0x26a   : > { %v3084_v52 = vpop.f32.mrb[17].mxu1 }
 0x26b   : > { %v3085_v54 = vadd.f32 %v3084_v52, %v3083_v12  ;;  %v3086_v35 = vpop.f32.mrb[18].mxu1  ;;  %v1482_v52 = vld [vmem:[#allocation2 + $0x80] sm:$0xff] }
 0x26c   : > { %v3087_v31 = vpop.f32.mrb[19].mxu1 }
 0x26d   : > { %v2083_v23 = vadd.f32 %v3085_v54, %v1474_v4  ;;  %v3088_v2 = vadd.f32 %v3087_v31, %v3086_v35  ;;  %v1483_v31 = vld [vmem:[#allocation2 + $0x88] sm:$0xff] }
 0x26f   : > { %v2413_v7 = vadd.f32 %v2381_v58, %v2083_v23  ;;  %v2084_v37 = vadd.f32 %v3088_v2, %v1475_v55  ;;  %v2290_v55 = vpop.permute.xlu0 %2289 }
 0x270   : > { %v2389_v23 = vmul.f32 %v4601_v43, %v2290_v55 }
 0x271   : > { %2445 = vst [vmem:[#allocation2 + $0x40] sm:$0xff] %v2413_v7  ;;  %v2414_v59 = vadd.f32 %v2382_v13, %v2084_v37  ;;  %v2295_v13 = vpop.permute.xlu1 %2294 }
 0x272   : > { %v2390_v7 = vmul.f32 %v4601_v43, %v2295_v13 }
 0x273   : > { %2446 = vst [vmem:[#allocation2 + $0x48] sm:$0xff] %v2414_v59 }
 0x274   : > { %v3089_v17 = vpop.f32.mrb[20].mxu1 }
 0x275   : > { %v3090_v19 = vpop.f32.mrb[21].mxu1 }
 0x276   : > { %v3091_v29 = vadd.f32 %v3090_v19, %v3089_v17  ;;  %v3092_v36 = vpop.f32.mrb[22].mxu1  ;;  %v1484_v19 = vld [vmem:[#allocation2 + $0x90] sm:$0xff] }
 0x277   : > { %v3093_v22 = vpop.f32.mrb[23].mxu1 }
 0x278   : > { %v2085_v1 = vadd.f32 %v3091_v29, %v1476_v9  ;;  %v3094_v26 = vadd.f32 %v3093_v22, %v3092_v36  ;;  %v1485_v22 = vld [vmem:[#allocation2 + $0x98] sm:$0xff] }
 0x27a   : > { %v2415_v61 = vadd.f32 %v2383_v8, %v2085_v1  ;;  %v2086_v30 = vadd.f32 %v3094_v26, %v1477_v0  ;;  %v2300_v0 = vpop.permute.xlu0 %2299 }
 0x27b   : > { %v2391_v1 = vmul.f32 %v4601_v43, %v2300_v0 }
 0x27c   : > { %2447 = vst [vmem:[#allocation2 + $0x50] sm:$0xff] %v2415_v61  ;;  %v2416_v49 = vadd.f32 %v2384_v42, %v2086_v30  ;;  %v2305_v42 = vpop.permute.xlu1 %2304 }
 0x27d   : > { %v2392_v61 = vmul.f32 %v4601_v43, %v2305_v42 }
 0x27e   : > { %2448 = vst [vmem:[#allocation2 + $0x58] sm:$0xff] %v2416_v49 }
 0x280   : > { %v3095_v24 = vpop.f32.mrb[24].mxu1 }
 0x281   : > { %v3096_v32 = vpop.f32.mrb[25].mxu1 }
 0x282   : > { %v3097_v51 = vadd.f32 %v3096_v32, %v3095_v24  ;;  %v3098_v44 = vpop.f32.mrb[26].mxu1  ;;  %v1486_v32 = vld [vmem:[#allocation2 + $0xa0] sm:$0xff] }
 0x283   : > { %v3099_v34 = vpop.f32.mrb[27].mxu1 }
 0x284   : > { %v2087_v63 = vadd.f32 %v3097_v51, %v1478_v14  ;;  %v3100_v60 = vadd.f32 %v3099_v34, %v3098_v44  ;;  %v1487_v34 = vld [vmem:[#allocation2 + $0xa8] sm:$0xff] }
 0x286   : > { %v2417_v20 = vadd.f32 %v2385_v6, %v2087_v63  ;;  %v2088_v21 = vadd.f32 %v3100_v60, %v1479_v56  ;;  %v2310_v56 = vpop.permute.xlu0 %2309 }
 0x287   : > { %v2393_v63 = vmul.f32 %v4601_v43, %v2310_v56 }
 0x288   : > { %2449 = vst [vmem:[#allocation2 + $0x60] sm:$0xff] %v2417_v20  ;;  %v2418_v28 = vadd.f32 %v2386_v27, %v2088_v21  ;;  %v2315_v27 = vpop.permute.xlu1 %2314 }
 0x289   : > { %v2394_v20 = vmul.f32 %v4601_v43, %v2315_v27 }
 0x28a   : > { %2450 = vst [vmem:[#allocation2 + $0x68] sm:$0xff] %v2418_v28 }
 0x28b   : > { %v3101_v39 = vpop.f32.mrb[28].mxu1 }
 0x28c   : > { %v3102_v48 = vpop.f32.mrb[29].mxu1 }
 0x28d   : > { %v3103_v11 = vadd.f32 %v3102_v48, %v3101_v39  ;;  %v3104_v50 = vpop.f32.mrb[30].mxu1  ;;  %v1488_v48 = vld [vmem:[#allocation2 + $0xb0] sm:$0xff] }
 0x28e   : > { %v3105_v62 = vpop.f32.mrb[31].mxu1 }
 0x28f   : > { %v2089_v40 = vadd.f32 %v3103_v11, %v1480_v33  ;;  %v3106_v53 = vadd.f32 %v3105_v62, %v3104_v50  ;;  %v1489_v62 = vld [vmem:[#allocation2 + $0xb8] sm:$0xff] }
 0x291   : > { %v2419_v57 = vadd.f32 %v2387_v3, %v2089_v40  ;;  %v2090_v45 = vadd.f32 %v3106_v53, %v1481_v46  ;;  %v2320_v46 = vpop.permute.xlu0 %2319 }
 0x292   : > { %v2395_v40 = vmul.f32 %v4601_v43, %v2320_v46 }
 0x293   : > { %2451 = vst [vmem:[#allocation2 + $0x70] sm:$0xff] %v2419_v57  ;;  %v2420_v12 = vadd.f32 %v2388_v16, %v2090_v45  ;;  %v2325_v16 = vpop.permute.xlu1 %2324 }
 0x294   : > { %v2396_v57 = vmul.f32 %v4601_v43, %v2325_v16 }
 0x295   : > { %2452 = vst [vmem:[#allocation2 + $0x78] sm:$0xff] %v2420_v12 }
 0x297   : > { %v3107_v4 = vpop.f32.mrb[32].mxu1 }
 0x298   : > { %v3108_v54 = vpop.f32.mrb[33].mxu1 }
 0x299   : > { %v3109_v35 = vadd.f32 %v3108_v54, %v3107_v4  ;;  %v3110_v10 = vpop.f32.mrb[34].mxu1  ;;  %v1490_v54 = vld [vmem:[#allocation2 + $0xc0] sm:$0xff] }
 0x29a   : > { %v3111_v58 = vpop.f32.mrb[35].mxu1 }
 0x29b   : > { %v2091_v2 = vadd.f32 %v3109_v35, %v1482_v52  ;;  %v3112_v38 = vadd.f32 %v3111_v58, %v3110_v10  ;;  %v1491_v58 = vld [vmem:[#allocation2 + $0xc8] sm:$0xff] }
 0x29d   : > { %v2421_v37 = vadd.f32 %v2389_v23, %v2091_v2  ;;  %v2092_v59 = vadd.f32 %v3112_v38, %v1483_v31  ;;  %v2330_v31 = vpop.permute.xlu0 %2329 }
 0x29e   : > { %v2397_v2 = vmul.f32 %v4601_v43, %v2330_v31  ;;  %v2477_v31 = vld [vmem:[#allocation2 + $0x18] sm:$0xff] (%p2469_p6) }
 0x29f   : > { %2453 = vst [vmem:[#allocation2 + $0x80] sm:$0xff] %v2421_v37  ;;  %v2422_v17 = vadd.f32 %v2390_v7, %v2092_v59  ;;  %v2335_v7 = vpop.permute.xlu1 %2334 }
 0x2a0   : > { %v2398_v37 = vmul.f32 %v4601_v43, %v2335_v7  ;;  %v2481_v7 = vld [vmem:[#allocation2 + $0x38] sm:$0xff] (%p2469_p6) }
 0x2a1   : > { %2454 = vst [vmem:[#allocation2 + $0x88] sm:$0xff] %v2422_v17 }
 0x2a2   : > { %v3113_v9 = vpop.f32.mrb[36].mxu1 }
 0x2a3   : > { %v3114_v29 = vpop.f32.mrb[37].mxu1 }
 0x2a4   : > { %v3115_v36 = vadd.f32 %v3114_v29, %v3113_v9  ;;  %v3116_v41 = vpop.f32.mrb[38].mxu1  ;;  %v1492_v29 = vld [vmem:[#allocation2 + $0xd0] sm:$0xff] }
 0x2a5   : > { %v3117_v8 = vpop.f32.mrb[39].mxu1 }
 0x2a6   : > { %v2093_v26 = vadd.f32 %v3115_v36, %v1484_v19  ;;  %v3118_v47 = vadd.f32 %v3117_v8, %v3116_v41  ;;  %v1493_v8 = vld [vmem:[#allocation2 + $0xd8] sm:$0xff] }
 0x2a8   : > { %v2423_v30 = vadd.f32 %v2391_v1, %v2093_v26  ;;  %v2094_v49 = vadd.f32 %v3118_v47, %v1485_v22  ;;  %v2340_v22 = vpop.permute.xlu0 %2339 }
 0x2a9   : > { %v2399_v26 = vmul.f32 %v4601_v43, %v2340_v22 }
 0x2aa   : > { %2455 = vst [vmem:[#allocation2 + $0x90] sm:$0xff] %v2423_v30  ;;  %v2424_v24 = vadd.f32 %v2392_v61, %v2094_v49  ;;  %v2345_v61 = vpop.permute.xlu1 %2344 }
 0x2ab   : > { %v2400_v30 = vmul.f32 %v4601_v43, %v2345_v61 }
 0x2ac   : > { %2456 = vst [vmem:[#allocation2 + $0x98] sm:$0xff] %v2424_v24 }
 0x2ae   : > { %v3119_v14 = vpop.f32.mrb[40].mxu1 }
 0x2af   : > { %v3120_v51 = vpop.f32.mrb[41].mxu1 }
 0x2b0   : > { %v3121_v44 = vadd.f32 %v3120_v51, %v3119_v14  ;;  %v3122_v25 = vpop.f32.mrb[42].mxu1  ;;  %v1494_v51 = vld [vmem:[#allocation2 + $0xe0] sm:$0xff] }
 0x2b1   : > { %v3123_v6 = vpop.f32.mrb[43].mxu1  ;;  %v2492_v61 = vld [vmem:[#allocation2 + $0x90] sm:$0xff] (%p2469_p6) }
 0x2b2   : > { %v2095_v60 = vadd.f32 %v3121_v44, %v1486_v32  ;;  %v3124_v15 = vadd.f32 %v3123_v6, %v3122_v25  ;;  %v1495_v6 = vld [vmem:[#allocation2 + $0xe8] sm:$0xff] }
 0x2b4   : > { %v2425_v21 = vadd.f32 %v2393_v63, %v2095_v60  ;;  %v2096_v28 = vadd.f32 %v3124_v15, %v1487_v34  ;;  %v2350_v34 = vpop.permute.xlu0 %2349 }
 0x2b5   : > { %v2401_v60 = vmul.f32 %v4601_v43, %v2350_v34 }
 0x2b6   : > { %2457 = vst [vmem:[#allocation2 + $0xa0] sm:$0xff] %v2425_v21  ;;  %v2426_v39 = vadd.f32 %v2394_v20, %v2096_v28  ;;  %v2355_v20 = vpop.permute.xlu1 %2354 }
 0x2b7   : > { %v2402_v21 = vmul.f32 %v4601_v43, %v2355_v20 }
 0x2b8   : > { %2458 = vst [vmem:[#allocation2 + $0xa8] sm:$0xff] %v2426_v39 }
 0x2b9   : > { %v3125_v33 = vpop.f32.mrb[44].mxu1 }
 0x2ba   : > { %v3126_v11 = vpop.f32.mrb[45].mxu1 }
 0x2bb   : > { %v3127_v50 = vadd.f32 %v3126_v11, %v3125_v33  ;;  %v3128_v18 = vpop.f32.mrb[46].mxu1  ;;  %v2360_v11 = vpop.permute.xlu0 %2359 }
 0x2bc   : > { %v3129_v3 = vpop.f32.mrb[47].mxu1 }
 0x2bd   : > { %v2097_v53 = vadd.f32 %v3127_v50, %v1488_v48  ;;  %v3130_v5 = vadd.f32 %v3129_v3, %v3128_v18  ;;  %v1496_v50 = vld [vmem:[#allocation2 + $0xf0] sm:$0xff]  ;;  %v2365_v3 = vpop.permute.xlu1 %2364 }
 0x2bf   : > { %v2427_v45 = vadd.f32 %v2395_v40, %v2097_v53  ;;  %v2098_v12 = vadd.f32 %v3130_v5, %v1489_v62  ;;  %v1497_v40 = vld [vmem:[#allocation2 + $0xf8] sm:$0xff]  ;;  %v2403_v5 = vmul.f32 %v4601_v43, %v2360_v11 }
 0x2c1   : > { %2459 = vst [vmem:[#allocation2 + $0xb0] sm:$0xff] %v2427_v45  ;;  %v2428_v4 = vadd.f32 %v2396_v57, %v2098_v12  ;;  %v2404_v45 = vmul.f32 %v4601_v43, %v2365_v3  ;;  %v2482_v43 = vld [vmem:[#allocation2 + $0x40] sm:$0xff] (%p2469_p6) }
 0x2c2   : > { %v3131_v52 = vpop.f32.mrb[48].mxu1 }
 0x2c3   : > { %2460 = vst [vmem:[#allocation2 + $0xb8] sm:$0xff] %v2428_v4  ;;  %v3132_v35 = vpop.f32.mrb[49].mxu1 }
 0x2c4   : > { %v3133_v10 = vadd.f32 %v3132_v35, %v3131_v52  ;;  %v3134_v55 = vpop.f32.mrb[50].mxu1  ;;  %v2475_v35 = vld [vmem:[#allocation2 + $0x8] sm:$0xff] (%p2469_p6) }
 0x2c5   : > { %v3135_v23 = vpop.f32.mrb[51].mxu1 }
 0x2c6   : > { %v2099_v38 = vadd.f32 %v3133_v10, %v1490_v54  ;;  %v3136_v13 = vadd.f32 %v3135_v23, %v3134_v55  ;;  %v2474_v54 = vld [vmem:[#allocation2] sm:$0xff] (%p2469_p6)  ;;  %v2476_v10 = vld [vmem:[#allocation2 + $0x10] sm:$0xff] (%p2469_p6)  ;;  %v2479_v23 = vld [vmem:[#allocation2 + $0x28] sm:$0xff] (%p2469_p6) }
 0x2c7   : > { %v2951_v55 = vpack.c.bf16 (%p2469_p6), %v2475_v35, %v2474_v54 }
 0x2c8   : > { %v2429_v59 = vadd.f32 %v2397_v2, %v2099_v38  ;;  %v2100_v17 = vadd.f32 %v3136_v13, %v1491_v58  ;;  %v2478_v58 = vld [vmem:[#allocation2 + $0x20] sm:$0xff] (%p2469_p6)  ;;  %v2956_v2 = vpack.c.bf16 (%p2469_p6), %v2477_v31, %v2476_v10  ;;  %v2480_v13 = vld [vmem:[#allocation2 + $0x30] sm:$0xff] (%p2469_p6) }
 0x2c9   : > { %v2961_v38 = vpack.c.bf16 (%p2469_p6), %v2479_v23, %v2478_v58  ;;  %2952 = vst [vmem:[#allocation6] sm:$0xff] (%p2469_p6), %v2951_v55  }
 0x2ca   : > { %2461 = vst [vmem:[#allocation2 + $0xc0] sm:$0xff] %v2429_v59  ;;  %v2430_v9 = vadd.f32 %v2398_v37, %v2100_v17  ;;  %v3137_v19 = vpop.f32.mrb[52].mxu1  ;;  %v2966_v37 = vpack.c.bf16 (%p2469_p6), %v2481_v7, %v2480_v13  ;;  %v2483_v59 = vld [vmem:[#allocation2 + $0x48] sm:$0xff] (%p2469_p6)  ;;  %v2484_v17 = vld [vmem:[#allocation2 + $0x50] sm:$0xff] (%p2469_p6)  ;;  %3028 = vst [vmem:[#allocation6 + $0x8] sm:$0xff] (%p2469_p6), %v2956_v2  }
 0x2cb   : > { %v3138_v36 = vpop.f32.mrb[53].mxu1  ;;  %3029 = vst [vmem:[#allocation6 + $0x10] sm:$0xff] (%p2469_p6), %v2961_v38  }
 0x2cc   : > { %2462 = vst [vmem:[#allocation2 + $0xc8] sm:$0xff] %v2430_v9  ;;  %v3139_v41 = vadd.f32 %v3138_v36, %v3137_v19  ;;  %v3140_v0 = vpop.f32.mrb[54].mxu1  ;;  %v2485_v9 = vld [vmem:[#allocation2 + $0x58] sm:$0xff] (%p2469_p6)  ;;  %v2971_v19 = vpack.c.bf16 (%p2469_p6), %v2483_v59, %v2482_v43  ;;  %v2486_v36 = vld [vmem:[#allocation2 + $0x60] sm:$0xff] (%p2469_p6)  ;;  %3030 = vst [vmem:[#allocation6 + $0x18] sm:$0xff] (%p2469_p6), %v2966_v37  }
 0x2cd   : > { %v3141_v1 = vpop.f32.mrb[55].mxu1 }
 0x2ce   : > { %v2101_v47 = vadd.f32 %v3139_v41, %v1492_v29  ;;  %v3142_v42 = vadd.f32 %v3141_v1, %v3140_v0  ;;  %v2976_v29 = vpack.c.bf16 (%p2469_p6), %v2485_v9, %v2484_v17  ;;  %v2487_v41 = vld [vmem:[#allocation2 + $0x68] sm:$0xff] (%p2469_p6)  ;;  %v2488_v0 = vld [vmem:[#allocation2 + $0x70] sm:$0xff] (%p2469_p6)  ;;  %v2490_v1 = vld [vmem:[#allocation2 + $0x80] sm:$0xff] (%p2469_p6)  ;;  %3031 = vst [vmem:[#allocation6 + $0x20] sm:$0xff] (%p2469_p6), %v2971_v19  }
 0x2cf   : > { %v2981_v22 = vpack.c.bf16 (%p2469_p6), %v2487_v41, %v2486_v36 }
 0x2d0   : > { %v2431_v49 = vadd.f32 %v2399_v26, %v2101_v47  ;;  %v2102_v24 = vadd.f32 %v3142_v42, %v1493_v8  ;;  %v2489_v8 = vld [vmem:[#allocation2 + $0x78] sm:$0xff] (%p2469_p6)  ;;  %v2491_v26 = vld [vmem:[#allocation2 + $0x88] sm:$0xff] (%p2469_p6)  ;;  %3032 = vst [vmem:[#allocation6 + $0x28] sm:$0xff] (%p2469_p6), %v2976_v29  }
 0x2d1   : > { %v2986_v47 = vpack.c.bf16 (%p2469_p6), %v2489_v8, %v2488_v0  ;;  %v2991_v42 = vpack.c.bf16 (%p2469_p6), %v2491_v26, %v2490_v1  ;;  %3033 = vst [vmem:[#allocation6 + $0x30] sm:$0xff] (%p2469_p6), %v2981_v22  }
 0x2d2   : > { %2463 = vst [vmem:[#allocation2 + $0xd0] sm:$0xff] %v2431_v49  ;;  %v2432_v14 = vadd.f32 %v2400_v30, %v2102_v24  ;;  %v3143_v32 = vpop.f32.mrb[56].mxu1  ;;  %v2493_v30 = vld [vmem:[#allocation2 + $0x98] sm:$0xff] (%p2469_p6)  ;;  %v2494_v49 = vld [vmem:[#allocation2 + $0xa0] sm:$0xff] (%p2469_p6) }
 0x2d3   : > { %v3144_v44 = vpop.f32.mrb[57].mxu1  ;;  %v2996_v24 = vpack.c.bf16 (%p2469_p6), %v2493_v30, %v2492_v61  ;;  %3034 = vst [vmem:[#allocation6 + $0x38] sm:$0xff] (%p2469_p6), %v2986_v47   ;;  %3035 = vst [vmem:[#allocation6 + $0x40] sm:$0xff] (%p2469_p6), %v2991_v42   ;;  %v2499_v34 = vld [vmem:[#allocation2 + $0xc8] sm:$0xff] (%p2469_p6) }
 0x2d4   : > { %2464 = vst [vmem:[#allocation2 + $0xd8] sm:$0xff] %v2432_v14  ;;  %v3145_v25 = vadd.f32 %v3144_v44, %v3143_v32  ;;  %v3146_v56 = vpop.f32.mrb[58].mxu1  ;;  %v2495_v14 = vld [vmem:[#allocation2 + $0xa8] sm:$0xff] (%p2469_p6)  ;;  %v2496_v32 = vld [vmem:[#allocation2 + $0xb0] sm:$0xff] (%p2469_p6) }
 0x2d5   : > { %v3147_v63 = vpop.f32.mrb[59].mxu1  ;;  %v3001_v44 = vpack.c.bf16 (%p2469_p6), %v2495_v14, %v2494_v49  ;;  %3036 = vst [vmem:[#allocation6 + $0x48] sm:$0xff] (%p2469_p6), %v2996_v24  }
 0x2d6   : > { %v2103_v15 = vadd.f32 %v3145_v25, %v1494_v51  ;;  %v3148_v27 = vadd.f32 %v3147_v63, %v3146_v56  ;;  %v2497_v51 = vld [vmem:[#allocation2 + $0xb8] sm:$0xff] (%p2469_p6)  ;;  %v2498_v56 = vld [vmem:[#allocation2 + $0xc0] sm:$0xff] (%p2469_p6) }
 0x2d7   : > { %v3006_v25 = vpack.c.bf16 (%p2469_p6), %v2497_v51, %v2496_v32  ;;  %v3011_v63 = vpack.c.bf16 (%p2469_p6), %v2499_v34, %v2498_v56  ;;  %3037 = vst [vmem:[#allocation6 + $0x50] sm:$0xff] (%p2469_p6), %v3001_v44  }
 0x2d8   : > { %v2433_v28 = vadd.f32 %v2401_v60, %v2103_v15  ;;  %v2104_v39 = vadd.f32 %v3148_v27, %v1495_v6 }
 0x2d9   : > { %v2500_v6 = vld [vmem:[#allocation2 + $0xd0] sm:$0xff] (%p2469_p6)  ;;  %3038 = vst [vmem:[#allocation6 + $0x58] sm:$0xff] (%p2469_p6), %v3006_v25   ;;  %3039 = vst [vmem:[#allocation6 + $0x60] sm:$0xff] (%p2469_p6), %v3011_v63  }
 0x2da   : > { %2465 = vst [vmem:[#allocation2 + $0xe0] sm:$0xff] %v2433_v28  ;;  %v2434_v33 = vadd.f32 %v2402_v21, %v2104_v39  ;;  %v3149_v48 = vpop.f32.mrb[60].mxu1 }
 0x2db   : > { %v3150_v18 = vpop.f32.mrb[61].mxu1  ;;  %v2501_v60 = vld [vmem:[#allocation2 + $0xd8] sm:$0xff] (%p2469_p6) }
 0x2dc   : > { %2466 = vst [vmem:[#allocation2 + $0xe8] sm:$0xff] %v2434_v33  ;;  %v3151_v46 = vadd.f32 %v3150_v18, %v3149_v48  ;;  %v3152_v62 = vpop.f32.mrb[62].mxu1  ;;  %v3016_v20 = vpack.c.bf16 (%p2469_p6), %v2501_v60, %v2500_v6 }
 0x2dd   : > { %v3153_v53 = vpop.f32.mrb[63].mxu1 }
 0x2de   : > { %v2105_v16 = vadd.f32 %v3151_v46, %v1496_v50  ;;  %v3154_v57 = vadd.f32 %v3153_v53, %v3152_v62  ;;  %2473 = sbr.rel (!%p2469_p6) target bundleno = 751 (0x2ef), region = 60  ;;  %3040 = vst [vmem:[#allocation6 + $0x68] sm:$0xff] (%p2469_p6), %v3016_v20  }
 0x2e0   : > { %v2435_v12 = vadd.f32 %v2403_v5, %v2105_v16  ;;  %v2106_v4 = vadd.f32 %v3154_v57, %v1497_v40 }
 0x2e1   : > { %v2502_v15 = vld [vmem:[#allocation2 + $0xe0] sm:$0xff] (%p2469_p6) }
 0x2e2   : > { %2467 = vst [vmem:[#allocation2 + $0xf0] sm:$0xff] %v2435_v12  ;;  %v2436_v52 = vadd.f32 %v2404_v45, %v2106_v4 }
 0x2e3   : > { %v2503_v27 = vld [vmem:[#allocation2 + $0xe8] sm:$0xff] (%p2469_p6) }
 0x2e4   : > { %2468 = vst [vmem:[#allocation2 + $0xf8] sm:$0xff] %v2436_v52  ;;  %v3021_v21 = vpack.c.bf16 (%p2469_p6), %v2503_v27, %v2502_v15 }
 0x2e6   : > { %3041 = vst [vmem:[#allocation6 + $0x70] sm:$0xff] %v3021_v21  }
 0x2e9   : > { %v2504_v28 = vld [vmem:[#allocation2 + $0xf0] sm:$0xff] }
 0x2eb   : > { %v2505_v39 = vld [vmem:[#allocation2 + $0xf8] sm:$0xff] }
 0x2ec   : > { %v3026_v33 = vpack.c.bf16 %v2505_v39, %v2504_v28 }
 0x2ee   : > { %3042 = vst [vmem:[#allocation6 + $0x78] sm:$0xff] %v3026_v33  }
 0x2ef PF: > { %p4640_p8 = scmp.eq.s32.totalorder %s2811_s24, 3  ;;  %s3480_s19 = smov [#allocation6]  }
 0x2f0   : > { %s2675_s28 = sshll.u32 %s3480_s19, 4  ;;  %s2676_s28 = int_to_ptr.vmem [resolvable:$true] %s2675_s28 }
 0x2f1   : > { %s3417_s29 = scalar_lea.vmem %s2676_s28, 2048  ;;  %p3424_p13 = scmp.lt.s32.totalorder %s2676_s28, %s2676_s28 }
 0x2f2   : > { %p3418_p10 = scmp.ne.s32.totalorder %s2676_s28, %s3417_s29  ;;  %p3425_p0 = scmp.lt.s32.totalorder %s3417_s29, %s3417_s29 }
 0x2f4   : > { %p3419_p11 = pnand %p3418_p10, %p4640_p8  ;;  %p3426_p1 = por %p3425_p0, %p3424_p13 }
 0x2f6   : > { %p3420_p12 = pneg %p3419_p11 }
 0x2f8   : > { %p3427_p2 = pnand %p3426_p1, %p3420_p12 }
 0x2fa   : > { %3430 = shalt.err (!%p3427_p2)
}
 0x2fb   : > { %s3431_s24 = scalar_lea.hbm %s4681_s6, 2048 }
 0x2fc   : > { %p3432_p5 = scmp.ne.s32.totalorder %s4681_s6, %s3431_s24  ;;  %p3437_p3 = scmp.lt.u32.totalorder %s3431_s24, %s4681_s6 }
 0x2fe   : > { %p3433_p7 = pnand %p3432_p5, %p4640_p8 }
 0x300   : > { %p3434_p9 = pneg %p3433_p7 }
 0x302   : > { %p3439_p4 = pnand %p3437_p3, %p3434_p9 }
 0x304   : > { %3442 = shalt.err (!%p3439_p4)
}
 0x305   : > { %s3481_s11 = smov 64   ;;  %s3482_s12 = smov 4  }
 0x306   : > { %3160 = dma.vmem_to_hbm [thread:$0]  (%p4640_p8), %s2676_s28, 2048, %s4681_s6, [#allocation5], %s3481_s11, %s3481_s11, %s3482_s12  }
 0x307   : > { %3460 = dma.done.wait (%p4640_p8), [#allocation5], 2048  }
 0x308   : > { %3462 = vsyncadd (%p4640_p8), [#allocation5], 4294965248 }
 0x309 PF: > { %s18_s23 = sadd.s32 1, %s3473_s23   ;;  %s4693_s21 = smov %s3469_s22 }
 0x30a   : > { %p15_p6 = scmp.ge.s32.totalorder %s18_s23, 6   ;;  %s4694_s22 = smov %s4696_s25 }
 0x30c   :  { %17 = sbr.rel (!%p15_p6) target bundleno = 3 (0x3), region = 102 }
 0x313   :  { %2691 = vsyncpa [#allocation4], 1 }
 0x314   :  { %2693 = vsyncpa [#allocation4 + $0x1], 1 }
 0x315   :  { %2694 = vsyncpa [#allocation5], 1 }
 0x316   :  { %2696 = vsyncpa [#allocation5 + $0x1], 1 }

</bundles_post_ra>
